<compile_context>
chip_gen: v6e
topology: v6e:2x2x1
jax: 0.10.0
libtpu: 0.0.40
codegen_flags: <defaults>
</compile_context>

<pallas_src>
import functools

import numpy as np

import jax
import jax.numpy as jnp
from jax.experimental import pallas as pl
from jax.experimental.pallas import tpu as pltpu


# ----------------------------------------------------------------------------
# sin/cos positional embedding (same as the torch helper, computed host-side)
# ----------------------------------------------------------------------------
def get_1d_sincos_pos_embed_from_grid(embed_dim, pos):
    assert embed_dim % 2 == 0
    omega = np.arange(embed_dim // 2, dtype=np.float64)
    omega /= embed_dim / 2.0
    omega = 1.0 / (10000.0 ** omega)
    pos = np.asarray(pos, dtype=np.float64).reshape(-1)
    out = np.einsum("m,d->md", pos, omega)
    return np.concatenate([np.sin(out), np.cos(out)], axis=1)


def generate_pos_embedding(horizon, dim):
    pe = get_1d_sincos_pos_embed_from_grid(dim, np.arange(horizon, dtype=np.int32))
    return jnp.asarray(pe, dtype=jnp.float32)          # (H, dim)


# ----------------------------------------------------------------------------
# fused kernel: encoder -> (+pos) -> fused QKV -> MHA(q=cur,k=prev,v=fut)
#               -> concat-heads out-proj -> lane-dense-padded decoder
# one grid step processes BLK rows, each holding K+2 segments of H timesteps.
# ----------------------------------------------------------------------------
def _dit_comp_kernel(x_ref, t_ref, pos_ref,
                     wx_ref, wt_ref, be_ref,
                     wcat_ref, bcat_ref,
                     wo_ref, bo_ref, wd_ref, bd_ref,
                     out_ref, proj_ref, attn_ref, *, num_heads):
    blk, kp2, H, D = x_ref.shape
    K = kp2 - 2
    E = wx_ref.shape[1]
    threeE = wcat_ref.shape[1]
    DP = wd_ref.shape[1]
    dh = E // num_heads
    cd = wx_ref.dtype                      # matmul compute dtype (f32 or bf16)

    Mall = blk * kp2 * H                   # all K+2 segments
    nseq = blk * K
    M = nseq * H                           # only the K "current" segments

    # --- encoder over all K+2 segments at once (each segment is reused up to
    #     three times as prev / cur / fut, so encode & project once).
    x2 = x_ref[...].reshape(Mall, D).astype(cd)
    h = jnp.dot(x2, wx_ref[...], preferred_element_type=jnp.float32)   # (Mall,E)
    h4 = h.reshape(blk, kp2, H, E)
    h4 = h4 + t_ref[...].reshape(blk, 1, 1, 1) * wt_ref[...].reshape(1, 1, 1, E)
    h4 = h4 + be_ref[...].reshape(1, 1, 1, E)
    h4 = jax.nn.gelu(h4, approximate=True)            # tanh GELU, f32 (VPU/EUP)
    h4 = h4 + pos_ref[...].reshape(1, 1, H, E)

    # --- fused Q/K/V projection: ONE tall lane-dense matmul (Mall,E)@(E,3E).
    #     1/sqrt(dh) is folded into the q columns/bias; bk is dropped (cancels
    #     in softmax); bv is folded into bo host-side.  Single cast to the
    #     compute dtype right before the matmul / scratch store.
    p = jnp.dot(h4.reshape(Mall, E).astype(cd), wcat_ref[...],
                preferred_element_type=jnp.float32)
    p = p + bcat_ref[...].reshape(1, threeE)
    proj_ref[...] = p.reshape(blk, kp2, H, threeE).astype(cd)

    # --- per-head attention; prev/cur/fut windows and head columns are static
    #     slices of the projection scratch ref (no value-level lane relayout,
    #     per-head temporaries die at the scratch store -> bounded live ranges).
    for hd in range(num_heads):
        qo = hd * dh
        q3 = proj_ref[:, 1:K + 1, :, qo:qo + dh].reshape(nseq, H, dh)
        k3 = proj_ref[:, 0:K, :, E + qo:E + qo + dh].reshape(nseq, H, dh)
        v3 = proj_ref[:, 2:kp2, :, 2 * E + qo:2 * E + qo + dh].reshape(nseq, H, dh)

        s = jnp.einsum("bqd,bkd->bqk", q3, k3,
                       preferred_element_type=jnp.float32)      # (nseq, H, H)
        s = s - jnp.max(s, axis=-1, keepdims=True)
        e = jnp.exp(s)
        w = e * pl.reciprocal(jnp.sum(e, axis=-1, keepdims=True), approx=True)
        o3 = jnp.einsum("bqk,bkd->bqd", w.astype(cd), v3,
                        preferred_element_type=jnp.float32)     # (nseq, H, dh)
        # concat-heads by writing this head's lane slice of the scratch
        attn_ref[:, :, :, qo:qo + dh] = o3.reshape(blk, K, H, dh).astype(cd)

    # --- out-projection (full-E contraction) + lane-dense-padded decoder
    a = attn_ref[...].reshape(M, E)
    y = jnp.dot(a, wo_ref[...], preferred_element_type=jnp.float32)
    y = y + bo_ref[...].reshape(1, E)
    y = jnp.dot(y.astype(cd), wd_ref[...], preferred_element_type=jnp.float32)
    y = y + bd_ref[...].reshape(1, DP)
    out_ref[...] = y.reshape(blk, K, H, DP).astype(out_ref.dtype)


# ----------------------------------------------------------------------------
# wrapper: free reshapes / weight folding & padding in JAX, compute in Pallas
# ----------------------------------------------------------------------------
def custom_dit_comp_diffuser_forward(t, full_traj, params, *, num_heads=4,
                                     mixed=True, block_rows=64,
                                     compute_dtype=jnp.bfloat16,
                                     vmem_limit_bytes=32 * 1024 * 1024):
    """t: (T,1,1,1,1); full_traj: (T,B,K+2,H,D) -> (T*B, K, H, D).

    block_rows: sweep upward (128-512) and raise vmem_limit_bytes toward
    64-96 MiB on 128-MiB-VMEM parts (v5e/v6e); defaults are v7x(64 MiB)-safe.
    Weight layout is (in, out), applied as x @ W + b (torch checkpoints store
    (out, in) and must be transposed before building `params`).
    """
    if not mixed:
        raise NotImplementedError("only the mixed=True path is implemented")

    T, B, Kp2, H, D = full_traj.shape
    K = Kp2 - 2
    E = params["w_enc"].shape[1]
    assert E % num_heads == 0, "hidden_dim must be divisible by num_heads"
    dh = E // num_heads
    NB = T * B

    cd = jnp.dtype(compute_dtype)
    f32 = jnp.float32

    # raw trajectory (no t concat, no prev/cur/fut HBM copies)
    x = full_traj.reshape(NB, Kp2, H, D).astype(f32)
    t_rows = jnp.broadcast_to(t.reshape(T, 1), (T, B)).reshape(NB, 1, 1).astype(f32)

    # block size: keep >=2 blocks so the single "parallel" grid axis can feed
    # both TensorCores on v7x even for small T*B.
    blk = int(max(1, min(block_rows, -(-NB // 2)))) if NB > 1 else 1
    nb_pad = -(-NB // blk) * blk
    if nb_pad != NB:
        x = jnp.pad(x, ((0, nb_pad - NB), (0, 0), (0, 0), (0, 0)))
        t_rows = jnp.pad(t_rows, ((0, nb_pad - NB), (0, 0), (0, 0)))
    num_blocks = nb_pad // blk

    pos = generate_pos_embedding(H, E)                                  # (H, E)

    # --- host-side weight preparation / folding --------------------------------
    scale = 1.0 / float(np.sqrt(dh))
    w_enc = params["w_enc"].astype(f32)                                 # (D+1,E)
    w_x = w_enc[:D].astype(cd)                                          # (D, E)
    w_t = w_enc[D:D + 1]                                                # (1, E)
    b_enc = params["b_enc"].reshape(1, E).astype(f32)

    # fused q/k/v weight: 1/sqrt(dh) folded into q columns; bk dropped
    # (per-query constant score shift cancels in softmax); bv folded into bo.
    w_cat = jnp.concatenate(
        [params["wq"] * scale, params["wk"], params["wv"]], axis=1).astype(cd)
    b_cat = jnp.concatenate(
        [params["bq"].reshape(1, E) * scale, jnp.zeros((1, 2 * E), f32)],
        axis=1).astype(f32)                                             # (1, 3E)
    wo = params["wo"].astype(cd)                                        # (E, E)
    bo_eff = (params["bo"].reshape(1, E)
              + params["bv"].reshape(1, E) @ params["wo"]).astype(f32)

    # decoder padded to a lane-dense (multiple-of-128) output width
    DP = -(-D // 128) * 128
    w_dec = jnp.zeros((E, DP), f32).at[:, :D].set(params["w_dec"]).astype(cd)
    b_dec = jnp.zeros((1, DP), f32).at[:, :D].set(params["b_dec"].reshape(1, D))

    consts = [pos, w_x, w_t, b_enc, w_cat, b_cat, wo, bo_eff, w_dec, b_dec]
    const_spec = lambda a: pl.BlockSpec(a.shape, lambda i: (0,) * a.ndim)

    kernel = functools.partial(_dit_comp_kernel, num_heads=num_heads)

    out = pl.pallas_call(
        kernel,
        out_shape=jax.ShapeDtypeStruct((nb_pad, K, H, DP), jnp.float32),
        grid=(num_blocks,),
        in_specs=[
            pl.BlockSpec((blk, Kp2, H, D), lambda i: (i, 0, 0, 0)),
            pl.BlockSpec((blk, 1, 1), lambda i: (i, 0, 0)),
        ] + [const_spec(a) for a in consts],
        out_specs=pl.BlockSpec((blk, K, H, DP), lambda i: (i, 0, 0, 0)),
        scratch_shapes=[pltpu.VMEM((blk, Kp2, H, 3 * E), cd),   # fused qkv proj
                        pltpu.VMEM((blk, K, H, E), cd)],        # concat-heads o
        compiler_params=pltpu.CompilerParams(
            dimension_semantics=("parallel",),          # megacore on v7x
            vmem_limit_bytes=vmem_limit_bytes),
    )(x, t_rows, *consts)

    # strip row padding and the lane padding of the decoder output
    return out[:NB, :, :, :D]


# ----------------------------------------------------------------------------
# pure-JAX reference mirroring the torch forward (for self-check)
# ----------------------------------------------------------------------------
def reference_forward(t, full_traj, params, num_heads=4):
    T, B, Kp2, H, D = full_traj.shape
    t_rep = jnp.broadcast_to(t, (T, B, Kp2, H, 1)).astype(full_traj.dtype)
    ft = jnp.concatenate([full_traj, t_rep], axis=-1)
    cur = ft[:, :, 1:-1].reshape(-1, H, D + 1)
    fut = ft[:, :, 2:].reshape(-1, H, D + 1)
    prev = ft[:, :, :-2].reshape(-1, H, D + 1)
    E = params["w_enc"].shape[1]
    pos = generate_pos_embedding(H, E)[None]

    enc = lambda x: jax.nn.gelu(x @ params["w_enc"] + params["b_enc"],
                                approximate=True)
    q_in, k_in, v_in = enc(cur) + pos, enc(prev) + pos, enc(fut) + pos
    q = q_in @ params["wq"] + params["bq"]
    k = k_in @ params["wk"] + params["bk"]
    v = v_in @ params["wv"] + params["bv"]
    N = q.shape[0]
    dh = E // num_heads
    qh = q.reshape(N, H, num_heads, dh).transpose(0, 2, 1, 3)
    kh = k.reshape(N, H, num_heads, dh).transpose(0, 2, 1, 3)
    vh = v.reshape(N, H, num_heads, dh).transpose(0, 2, 1, 3)
    s = jnp.einsum("nhqd,nhkd->nhqk", qh, kh) / np.sqrt(dh)
    p = jax.nn.softmax(s, axis=-1)
    o = jnp.einsum("nhqk,nhkd->nhqd", p, vh).transpose(0, 2, 1, 3).reshape(N, H, E)
    o = o @ params["wo"] + params["bo"]
    y = o @ params["w_dec"] + params["b_dec"]
    return y.reshape(T * B, Kp2 - 2, H, D)


# ----------------------------------------------------------------------------
# deterministic parameter init (shapes follow the torch module __init__)
# ----------------------------------------------------------------------------
def init_params(key, obs_dim, hidden_dim):
    keys = jax.random.split(key, 11)
    std = 0.05
    p = {
        "w_enc": jax.random.normal(keys[0], (obs_dim + 1, hidden_dim)) * std,
        "b_enc": jax.random.normal(keys[1], (1, hidden_dim)) * std,
        "wq": jax.random.normal(keys[2], (hidden_dim, hidden_dim)) * std,
        "bq": jax.random.normal(keys[3], (1, hidden_dim)) * std,
        "wk": jax.random.normal(keys[4], (hidden_dim, hidden_dim)) * std,
        "bk": jax.random.normal(keys[5], (1, hidden_dim)) * std,
        "wv": jax.random.normal(keys[6], (hidden_dim, hidden_dim)) * std,
        "bv": jax.random.normal(keys[7], (1, hidden_dim)) * std,
        "wo": jax.random.normal(keys[8], (hidden_dim, hidden_dim)) * std,
        "bo": jax.random.normal(keys[9], (1, hidden_dim)) * std,
        "w_dec": jax.random.normal(keys[10], (hidden_dim, obs_dim)) * std,
        "b_dec": jnp.zeros((1, obs_dim)),
    }
    return {k: v.astype(jnp.float32) for k, v in p.items()}


if __name__ == "__main__":
    # small shapes consistent with the module's forward
    T, B, Kp2, H, D = 2, 2, 5, 8, 4        # K+2 = 5 -> K = 3 segments
    hidden_dim, num_heads = 32, 4

    key = jax.random.PRNGKey(0)
    k_t, k_x, k_p = jax.random.split(key, 3)
    t = jax.random.uniform(k_t, (T, 1, 1, 1, 1), dtype=jnp.float32)
    full_traj = jax.random.normal(k_x, (T, B, Kp2, H, D), dtype=jnp.float32)
    params = init_params(k_p, obs_dim=D, hidden_dim=hidden_dim)

    ref = jax.block_until_ready(reference_forward(t, full_traj, params,
                                                  num_heads=num_heads))

    # f32 matmul-operand path: tight tolerance
    out_f32 = jax.block_until_ready(
        custom_dit_comp_diffuser_forward(t, full_traj, params,
                                         num_heads=num_heads, mixed=True,
                                         compute_dtype=jnp.float32))
    assert out_f32.shape == (T * B, Kp2 - 2, H, D)
    np.testing.assert_allclose(np.asarray(out_f32), np.asarray(ref),
                               rtol=3e-3, atol=3e-3)

    # default bf16 matmul-operand path (MXU-native on all generations),
    # f32 accumulation / elementwise: looser tolerance
    out_bf16 = jax.block_until_ready(
        custom_dit_comp_diffuser_forward(t, full_traj, params,
                                         num_heads=num_heads, mixed=True,
                                         compute_dtype=jnp.bfloat16))
    assert out_bf16.shape == (T * B, Kp2 - 2, H, D)
    np.testing.assert_allclose(np.asarray(out_bf16), np.asarray(ref),
                               rtol=2e-2, atol=2e-2)

    print("KERNEL_OK")
</pallas_src>

<mosaic_0001>
module attributes {stable_mosaic.version = 11 : i64} {
  func.func @_dit_comp_kernel(%arg0: i32, %arg1: memref<2x5x8x4xf32, #tpu.memory_space<vmem>>, %arg2: memref<2x1x1xf32, #tpu.memory_space<vmem>>, %arg3: memref<8x32xf32, #tpu.memory_space<vmem>>, %arg4: memref<4x32xf32, #tpu.memory_space<vmem>>, %arg5: memref<1x32xf32, #tpu.memory_space<vmem>>, %arg6: memref<1x32xf32, #tpu.memory_space<vmem>>, %arg7: memref<32x96xf32, #tpu.memory_space<vmem>>, %arg8: memref<1x96xf32, #tpu.memory_space<vmem>>, %arg9: memref<32x32xf32, #tpu.memory_space<vmem>>, %arg10: memref<1x32xf32, #tpu.memory_space<vmem>>, %arg11: memref<32x128xf32, #tpu.memory_space<vmem>>, %arg12: memref<1x128xf32, #tpu.memory_space<vmem>>, %arg13: memref<2x3x8x128xf32, #tpu.memory_space<vmem>>, %arg14: memref<2x5x8x96xf32, #tpu.memory_space<vmem>>, %arg15: memref<2x3x8x32xf32, #tpu.memory_space<vmem>>) attributes {dimension_semantics = [#tpu.dimension_semantics<parallel>], iteration_bounds = array<i64: 2>, scalar_prefetch = 0 : i64, scratch_operands = 2 : i64, tpu.core_type = #tpu.core_type<tc>, window_params = [{transform_indices = @transform_0, window_bounds = array<i64: 2, 5, 8, 4>}, {transform_indices = @transform_1, window_bounds = array<i64: 2, 1, 1>}, {pipeline_mode = #tpu.pipeline_mode<synchronous>, transform_indices = @transform_2, window_bounds = array<i64: 8, 32>}, {pipeline_mode = #tpu.pipeline_mode<synchronous>, transform_indices = @transform_3, window_bounds = array<i64: 4, 32>}, {pipeline_mode = #tpu.pipeline_mode<synchronous>, transform_indices = @transform_4, window_bounds = array<i64: 1, 32>}, {pipeline_mode = #tpu.pipeline_mode<synchronous>, transform_indices = @transform_5, window_bounds = array<i64: 1, 32>}, {pipeline_mode = #tpu.pipeline_mode<synchronous>, transform_indices = @transform_6, window_bounds = array<i64: 32, 96>}, {pipeline_mode = #tpu.pipeline_mode<synchronous>, transform_indices = @transform_7, window_bounds = array<i64: 1, 96>}, {pipeline_mode = #tpu.pipeline_mode<synchronous>, transform_indices = @transform_8, window_bounds = array<i64: 32, 32>}, {pipeline_mode = #tpu.pipeline_mode<synchronous>, transform_indices = @transform_9, window_bounds = array<i64: 1, 32>}, {pipeline_mode = #tpu.pipeline_mode<synchronous>, transform_indices = @transform_10, window_bounds = array<i64: 32, 128>}, {pipeline_mode = #tpu.pipeline_mode<synchronous>, transform_indices = @transform_11, window_bounds = array<i64: 1, 128>}, {transform_indices = @transform_12, window_bounds = array<i64: 2, 3, 8, 128>}]} {
    %c0 = arith.constant 0 : index
    %c0_0 = arith.constant 0 : index
    %c0_1 = arith.constant 0 : index
    %c0_2 = arith.constant 0 : index
    %0 = vector.load %arg1[%c0, %c0_0, %c0_1, %c0_2] : memref<2x5x8x4xf32, #tpu.memory_space<vmem>>, vector<2x5x8x4xf32>
    %1 = vector.shape_cast %0 : vector<2x5x8x4xf32> to vector<80x4xf32>
    %c0_3 = arith.constant 0 : index
    %c0_4 = arith.constant 0 : index
    %2 = vector.load %arg4[%c0_3, %c0_4] : memref<4x32xf32, #tpu.memory_space<vmem>>, vector<4x32xf32>
    %cst = arith.constant dense<0.000000e+00> : vector<80x32xf32>
    %3 = tpu.matmul %1, %2, %cst {dimension_numbers = #tpu.dot_dimension_numbers<[1], [0], [0], [1], [0, 0, 1, 1], [], []>} : vector<80x4xf32>, vector<4x32xf32>, vector<80x32xf32> -> vector<80x32xf32>
    %4 = vector.shape_cast %3 : vector<80x32xf32> to vector<2x5x8x32xf32>
    %c0_5 = arith.constant 0 : index
    %c0_6 = arith.constant 0 : index
    %c0_7 = arith.constant 0 : index
    %5 = vector.load %arg2[%c0_5, %c0_6, %c0_7] : memref<2x1x1xf32, #tpu.memory_space<vmem>>, vector<2x1x1xf32>
    %6 = vector.shape_cast %5 : vector<2x1x1xf32> to vector<2x1x1x1xf32>
    %c0_8 = arith.constant 0 : index
    %c0_9 = arith.constant 0 : index
    %7 = vector.load %arg5[%c0_8, %c0_9] : memref<1x32xf32, #tpu.memory_space<vmem>>, vector<1x32xf32>
    %8 = vector.shape_cast %7 : vector<1x32xf32> to vector<1x1x1x32xf32>
    %9 = vector.broadcast %6 : vector<2x1x1x1xf32> to vector<2x1x1x32xf32>
    %10 = vector.broadcast %8 : vector<1x1x1x32xf32> to vector<2x1x1x32xf32>
    %11 = arith.mulf %9, %10 : vector<2x1x1x32xf32>
    %12 = vector.broadcast %11 : vector<2x1x1x32xf32> to vector<2x5x8x32xf32>
    %13 = arith.addf %4, %12 : vector<2x5x8x32xf32>
    %c0_10 = arith.constant 0 : index
    %c0_11 = arith.constant 0 : index
    %14 = vector.load %arg6[%c0_10, %c0_11] : memref<1x32xf32, #tpu.memory_space<vmem>>, vector<1x32xf32>
    %15 = vector.shape_cast %14 : vector<1x32xf32> to vector<1x1x1x32xf32>
    %16 = vector.broadcast %15 : vector<1x1x1x32xf32> to vector<2x5x8x32xf32>
    %17 = arith.addf %13, %16 : vector<2x5x8x32xf32>
    %18 = arith.mulf %17, %17 : vector<2x5x8x32xf32>
    %19 = arith.mulf %17, %18 : vector<2x5x8x32xf32>
    %cst_12 = arith.constant 4.471500e-02 : f32
    %20 = vector.broadcast %cst_12 : f32 to vector<2x5x8x32xf32>
    %21 = arith.mulf %20, %19 : vector<2x5x8x32xf32>
    %22 = arith.addf %17, %21 : vector<2x5x8x32xf32>
    %cst_13 = arith.constant 0.797884583 : f32
    %23 = vector.broadcast %cst_13 : f32 to vector<2x5x8x32xf32>
    %24 = arith.mulf %23, %22 : vector<2x5x8x32xf32>
    %25 = math.tanh %24 : vector<2x5x8x32xf32>
    %cst_14 = arith.constant 1.000000e+00 : f32
    %26 = vector.broadcast %cst_14 : f32 to vector<2x5x8x32xf32>
    %27 = arith.addf %26, %25 : vector<2x5x8x32xf32>
    %cst_15 = arith.constant 5.000000e-01 : f32
    %28 = vector.broadcast %cst_15 : f32 to vector<2x5x8x32xf32>
    %29 = arith.mulf %28, %27 : vector<2x5x8x32xf32>
    %30 = arith.mulf %17, %29 : vector<2x5x8x32xf32>
    %c0_16 = arith.constant 0 : index
    %c0_17 = arith.constant 0 : index
    %31 = vector.load %arg3[%c0_16, %c0_17] : memref<8x32xf32, #tpu.memory_space<vmem>>, vector<8x32xf32>
    %32 = vector.shape_cast %31 : vector<8x32xf32> to vector<1x1x8x32xf32>
    %33 = vector.broadcast %32 : vector<1x1x8x32xf32> to vector<2x5x8x32xf32>
    %34 = arith.addf %30, %33 : vector<2x5x8x32xf32>
    %35 = vector.shape_cast %34 : vector<2x5x8x32xf32> to vector<80x32xf32>
    %c0_18 = arith.constant 0 : index
    %c0_19 = arith.constant 0 : index
    %36 = vector.load %arg7[%c0_18, %c0_19] : memref<32x96xf32, #tpu.memory_space<vmem>>, vector<32x96xf32>
    %cst_20 = arith.constant dense<0.000000e+00> : vector<80x96xf32>
    %37 = tpu.matmul %35, %36, %cst_20 {dimension_numbers = #tpu.dot_dimension_numbers<[1], [0], [0], [1], [0, 0, 1, 1], [], []>} : vector<80x32xf32>, vector<32x96xf32>, vector<80x96xf32> -> vector<80x96xf32>
    %c0_21 = arith.constant 0 : index
    %c0_22 = arith.constant 0 : index
    %38 = vector.load %arg8[%c0_21, %c0_22] : memref<1x96xf32, #tpu.memory_space<vmem>>, vector<1x96xf32>
    %39 = vector.broadcast %38 : vector<1x96xf32> to vector<80x96xf32>
    %40 = arith.addf %37, %39 : vector<80x96xf32>
    %41 = vector.shape_cast %40 : vector<80x96xf32> to vector<2x5x8x96xf32>
    %c0_23 = arith.constant 0 : index
    %c0_24 = arith.constant 0 : index
    %c0_25 = arith.constant 0 : index
    %c0_26 = arith.constant 0 : index
    %42 = vector.load %arg14[%c0_23, %c0_24, %c0_25, %c0_26] : memref<2x5x8x96xf32, #tpu.memory_space<vmem>>, vector<2x5x8x96xf32>
    tpu.vector_store %arg14[%c0_23, %c0_24, %c0_25, %c0_26], %41 {strides = array<i32>} : memref<2x5x8x96xf32, #tpu.memory_space<vmem>>, vector<2x5x8x96xf32>,
    %c0_27 = arith.constant 0 : index
    %c1 = arith.constant 1 : index
    %c0_28 = arith.constant 0 : index
    %c0_29 = arith.constant 0 : index
    %43 = vector.load %arg14[%c0_27, %c1, %c0_28, %c0_29] : memref<2x5x8x96xf32, #tpu.memory_space<vmem>>, vector<2x3x8x8xf32>
    %44 = vector.shape_cast %43 : vector<2x3x8x8xf32> to vector<6x8x8xf32>
    %c0_30 = arith.constant 0 : index
    %c0_31 = arith.constant 0 : index
    %c0_32 = arith.constant 0 : index
    %c32 = arith.constant 32 : index
    %45 = vector.load %arg14[%c0_30, %c0_31, %c0_32, %c32] : memref<2x5x8x96xf32, #tpu.memory_space<vmem>>, vector<2x3x8x8xf32>
    %46 = vector.shape_cast %45 : vector<2x3x8x8xf32> to vector<6x8x8xf32>
    %c0_33 = arith.constant 0 : index
    %c2 = arith.constant 2 : index
    %c0_34 = arith.constant 0 : index
    %c64 = arith.constant 64 : index
    %47 = vector.load %arg14[%c0_33, %c2, %c0_34, %c64] : memref<2x5x8x96xf32, #tpu.memory_space<vmem>>, vector<2x3x8x8xf32>
    %48 = vector.shape_cast %47 : vector<2x3x8x8xf32> to vector<6x8x8xf32>
    "tpu.trace_start"() <{level = 10 : i32, message = "bqd,bkd->bqk"}> : () -> ()
    %cst_35 = arith.constant dense<0.000000e+00> : vector<6x8x8xf32>
    %49 = tpu.matmul %44, %46, %cst_35 {dimension_numbers = #tpu.dot_dimension_numbers<[2], [2], [1], [1], [0, 0, 0, 1, 1, 1], [0], [0]>} : vector<6x8x8xf32>, vector<6x8x8xf32>, vector<6x8x8xf32> -> vector<6x8x8xf32>
    "tpu.trace_stop"() : () -> ()
    %cst_36 = arith.constant dense<0xFF800000> : vector<6x8xf32>
    %50 = vector.multi_reduction <maximumf>, %49, %cst_36 [2] : vector<6x8x8xf32> to vector<6x8xf32>
    %51 = vector.shape_cast %50 : vector<6x8xf32> to vector<6x8x1xf32>
    %52 = vector.broadcast %51 : vector<6x8x1xf32> to vector<6x8x8xf32>
    %53 = arith.subf %49, %52 : vector<6x8x8xf32>
    %54 = math.exp %53 : vector<6x8x8xf32>
    %cst_37 = arith.constant dense<0.000000e+00> : vector<6x8xf32>
    %55 = vector.multi_reduction <add>, %54, %cst_37 [2] : vector<6x8x8xf32> to vector<6x8xf32>
    %56 = vector.shape_cast %55 : vector<6x8xf32> to vector<6x8x1xf32>
    %57 = tpu.reciprocal %56 {approx = true} : vector<6x8x1xf32> -> vector<6x8x1xf32>
    %58 = vector.broadcast %57 : vector<6x8x1xf32> to vector<6x8x8xf32>
    %59 = arith.mulf %54, %58 : vector<6x8x8xf32>
    "tpu.trace_start"() <{level = 10 : i32, message = "bqk,bkd->bqd"}> : () -> ()
    %cst_38 = arith.constant dense<0.000000e+00> : vector<6x8x8xf32>
    %60 = tpu.matmul %59, %48, %cst_38 {dimension_numbers = #tpu.dot_dimension_numbers<[2], [1], [1], [2], [0, 0, 0, 1, 1, 2], [0], [0]>} : vector<6x8x8xf32>, vector<6x8x8xf32>, vector<6x8x8xf32> -> vector<6x8x8xf32>
    "tpu.trace_stop"() : () -> ()
    %61 = vector.shape_cast %60 : vector<6x8x8xf32> to vector<2x3x8x8xf32>
    %c0_39 = arith.constant 0 : index
    %c0_40 = arith.constant 0 : index
    %c0_41 = arith.constant 0 : index
    %c0_42 = arith.constant 0 : index
    %62 = vector.load %arg15[%c0_39, %c0_40, %c0_41, %c0_42] : memref<2x3x8x32xf32, #tpu.memory_space<vmem>>, vector<2x3x8x8xf32>
    tpu.vector_store %arg15[%c0_39, %c0_40, %c0_41, %c0_42], %61 {strides = array<i32>} : memref<2x3x8x32xf32, #tpu.memory_space<vmem>>, vector<2x3x8x8xf32>,
    %c0_43 = arith.constant 0 : index
    %c1_44 = arith.constant 1 : index
    %c0_45 = arith.constant 0 : index
    %c8 = arith.constant 8 : index
    %63 = vector.load %arg14[%c0_43, %c1_44, %c0_45, %c8] : memref<2x5x8x96xf32, #tpu.memory_space<vmem>>, vector<2x3x8x8xf32>
    %64 = vector.shape_cast %63 : vector<2x3x8x8xf32> to vector<6x8x8xf32>
    %c0_46 = arith.constant 0 : index
    %c0_47 = arith.constant 0 : index
    %c0_48 = arith.constant 0 : index
    %c40 = arith.constant 40 : index
    %65 = vector.load %arg14[%c0_46, %c0_47, %c0_48, %c40] : memref<2x5x8x96xf32, #tpu.memory_space<vmem>>, vector<2x3x8x8xf32>
    %66 = vector.shape_cast %65 : vector<2x3x8x8xf32> to vector<6x8x8xf32>
    %c0_49 = arith.constant 0 : index
    %c2_50 = arith.constant 2 : index
    %c0_51 = arith.constant 0 : index
    %c72 = arith.constant 72 : index
    %67 = vector.load %arg14[%c0_49, %c2_50, %c0_51, %c72] : memref<2x5x8x96xf32, #tpu.memory_space<vmem>>, vector<2x3x8x8xf32>
    %68 = vector.shape_cast %67 : vector<2x3x8x8xf32> to vector<6x8x8xf32>
    "tpu.trace_start"() <{level = 10 : i32, message = "bqd,bkd->bqk"}> : () -> ()
    %cst_52 = arith.constant dense<0.000000e+00> : vector<6x8x8xf32>
    %69 = tpu.matmul %64, %66, %cst_52 {dimension_numbers = #tpu.dot_dimension_numbers<[2], [2], [1], [1], [0, 0, 0, 1, 1, 1], [0], [0]>} : vector<6x8x8xf32>, vector<6x8x8xf32>, vector<6x8x8xf32> -> vector<6x8x8xf32>
    "tpu.trace_stop"() : () -> ()
    %cst_53 = arith.constant dense<0xFF800000> : vector<6x8xf32>
    %70 = vector.multi_reduction <maximumf>, %69, %cst_53 [2] : vector<6x8x8xf32> to vector<6x8xf32>
    %71 = vector.shape_cast %70 : vector<6x8xf32> to vector<6x8x1xf32>
    %72 = vector.broadcast %71 : vector<6x8x1xf32> to vector<6x8x8xf32>
    %73 = arith.subf %69, %72 : vector<6x8x8xf32>
    %74 = math.exp %73 : vector<6x8x8xf32>
    %cst_54 = arith.constant dense<0.000000e+00> : vector<6x8xf32>
    %75 = vector.multi_reduction <add>, %74, %cst_54 [2] : vector<6x8x8xf32> to vector<6x8xf32>
    %76 = vector.shape_cast %75 : vector<6x8xf32> to vector<6x8x1xf32>
    %77 = tpu.reciprocal %76 {approx = true} : vector<6x8x1xf32> -> vector<6x8x1xf32>
    %78 = vector.broadcast %77 : vector<6x8x1xf32> to vector<6x8x8xf32>
    %79 = arith.mulf %74, %78 : vector<6x8x8xf32>
    "tpu.trace_start"() <{level = 10 : i32, message = "bqk,bkd->bqd"}> : () -> ()
    %cst_55 = arith.constant dense<0.000000e+00> : vector<6x8x8xf32>
    %80 = tpu.matmul %79, %68, %cst_55 {dimension_numbers = #tpu.dot_dimension_numbers<[2], [1], [1], [2], [0, 0, 0, 1, 1, 2], [0], [0]>} : vector<6x8x8xf32>, vector<6x8x8xf32>, vector<6x8x8xf32> -> vector<6x8x8xf32>
    "tpu.trace_stop"() : () -> ()
    %81 = vector.shape_cast %80 : vector<6x8x8xf32> to vector<2x3x8x8xf32>
    %c0_56 = arith.constant 0 : index
    %c0_57 = arith.constant 0 : index
    %c0_58 = arith.constant 0 : index
    %c8_59 = arith.constant 8 : index
    %82 = vector.load %arg15[%c0_56, %c0_57, %c0_58, %c8_59] : memref<2x3x8x32xf32, #tpu.memory_space<vmem>>, vector<2x3x8x8xf32>
    tpu.vector_store %arg15[%c0_56, %c0_57, %c0_58, %c8_59], %81 {strides = array<i32>} : memref<2x3x8x32xf32, #tpu.memory_space<vmem>>, vector<2x3x8x8xf32>,
    %c0_60 = arith.constant 0 : index
    %c1_61 = arith.constant 1 : index
    %c0_62 = arith.constant 0 : index
    %c16 = arith.constant 16 : index
    %83 = vector.load %arg14[%c0_60, %c1_61, %c0_62, %c16] : memref<2x5x8x96xf32, #tpu.memory_space<vmem>>, vector<2x3x8x8xf32>
    %84 = vector.shape_cast %83 : vector<2x3x8x8xf32> to vector<6x8x8xf32>
    %c0_63 = arith.constant 0 : index
    %c0_64 = arith.constant 0 : index
    %c0_65 = arith.constant 0 : index
    %c48 = arith.constant 48 : index
    %85 = vector.load %arg14[%c0_63, %c0_64, %c0_65, %c48] : memref<2x5x8x96xf32, #tpu.memory_space<vmem>>, vector<2x3x8x8xf32>
    %86 = vector.shape_cast %85 : vector<2x3x8x8xf32> to vector<6x8x8xf32>
    %c0_66 = arith.constant 0 : index
    %c2_67 = arith.constant 2 : index
    %c0_68 = arith.constant 0 : index
    %c80 = arith.constant 80 : index
    %87 = vector.load %arg14[%c0_66, %c2_67, %c0_68, %c80] : memref<2x5x8x96xf32, #tpu.memory_space<vmem>>, vector<2x3x8x8xf32>
    %88 = vector.shape_cast %87 : vector<2x3x8x8xf32> to vector<6x8x8xf32>
    "tpu.trace_start"() <{level = 10 : i32, message = "bqd,bkd->bqk"}> : () -> ()
    %cst_69 = arith.constant dense<0.000000e+00> : vector<6x8x8xf32>
    %89 = tpu.matmul %84, %86, %cst_69 {dimension_numbers = #tpu.dot_dimension_numbers<[2], [2], [1], [1], [0, 0, 0, 1, 1, 1], [0], [0]>} : vector<6x8x8xf32>, vector<6x8x8xf32>, vector<6x8x8xf32> -> vector<6x8x8xf32>
    "tpu.trace_stop"() : () -> ()
    %cst_70 = arith.constant dense<0xFF800000> : vector<6x8xf32>
    %90 = vector.multi_reduction <maximumf>, %89, %cst_70 [2] : vector<6x8x8xf32> to vector<6x8xf32>
    %91 = vector.shape_cast %90 : vector<6x8xf32> to vector<6x8x1xf32>
    %92 = vector.broadcast %91 : vector<6x8x1xf32> to vector<6x8x8xf32>
    %93 = arith.subf %89, %92 : vector<6x8x8xf32>
    %94 = math.exp %93 : vector<6x8x8xf32>
    %cst_71 = arith.constant dense<0.000000e+00> : vector<6x8xf32>
    %95 = vector.multi_reduction <add>, %94, %cst_71 [2] : vector<6x8x8xf32> to vector<6x8xf32>
    %96 = vector.shape_cast %95 : vector<6x8xf32> to vector<6x8x1xf32>
    %97 = tpu.reciprocal %96 {approx = true} : vector<6x8x1xf32> -> vector<6x8x1xf32>
    %98 = vector.broadcast %97 : vector<6x8x1xf32> to vector<6x8x8xf32>
    %99 = arith.mulf %94, %98 : vector<6x8x8xf32>
    "tpu.trace_start"() <{level = 10 : i32, message = "bqk,bkd->bqd"}> : () -> ()
    %cst_72 = arith.constant dense<0.000000e+00> : vector<6x8x8xf32>
    %100 = tpu.matmul %99, %88, %cst_72 {dimension_numbers = #tpu.dot_dimension_numbers<[2], [1], [1], [2], [0, 0, 0, 1, 1, 2], [0], [0]>} : vector<6x8x8xf32>, vector<6x8x8xf32>, vector<6x8x8xf32> -> vector<6x8x8xf32>
    "tpu.trace_stop"() : () -> ()
    %101 = vector.shape_cast %100 : vector<6x8x8xf32> to vector<2x3x8x8xf32>
    %c0_73 = arith.constant 0 : index
    %c0_74 = arith.constant 0 : index
    %c0_75 = arith.constant 0 : index
    %c16_76 = arith.constant 16 : index
    %102 = vector.load %arg15[%c0_73, %c0_74, %c0_75, %c16_76] : memref<2x3x8x32xf32, #tpu.memory_space<vmem>>, vector<2x3x8x8xf32>
    tpu.vector_store %arg15[%c0_73, %c0_74, %c0_75, %c16_76], %101 {strides = array<i32>} : memref<2x3x8x32xf32, #tpu.memory_space<vmem>>, vector<2x3x8x8xf32>,
    %c0_77 = arith.constant 0 : index
    %c1_78 = arith.constant 1 : index
    %c0_79 = arith.constant 0 : index
    %c24 = arith.constant 24 : index
    %103 = vector.load %arg14[%c0_77, %c1_78, %c0_79, %c24] : memref<2x5x8x96xf32, #tpu.memory_space<vmem>>, vector<2x3x8x8xf32>
    %104 = vector.shape_cast %103 : vector<2x3x8x8xf32> to vector<6x8x8xf32>
    %c0_80 = arith.constant 0 : index
    %c0_81 = arith.constant 0 : index
    %c0_82 = arith.constant 0 : index
    %c56 = arith.constant 56 : index
    %105 = vector.load %arg14[%c0_80, %c0_81, %c0_82, %c56] : memref<2x5x8x96xf32, #tpu.memory_space<vmem>>, vector<2x3x8x8xf32>
    %106 = vector.shape_cast %105 : vector<2x3x8x8xf32> to vector<6x8x8xf32>
    %c0_83 = arith.constant 0 : index
    %c2_84 = arith.constant 2 : index
    %c0_85 = arith.constant 0 : index
    %c88 = arith.constant 88 : index
    %107 = vector.load %arg14[%c0_83, %c2_84, %c0_85, %c88] : memref<2x5x8x96xf32, #tpu.memory_space<vmem>>, vector<2x3x8x8xf32>
    %108 = vector.shape_cast %107 : vector<2x3x8x8xf32> to vector<6x8x8xf32>
    "tpu.trace_start"() <{level = 10 : i32, message = "bqd,bkd->bqk"}> : () -> ()
    %cst_86 = arith.constant dense<0.000000e+00> : vector<6x8x8xf32>
    %109 = tpu.matmul %104, %106, %cst_86 {dimension_numbers = #tpu.dot_dimension_numbers<[2], [2], [1], [1], [0, 0, 0, 1, 1, 1], [0], [0]>} : vector<6x8x8xf32>, vector<6x8x8xf32>, vector<6x8x8xf32> -> vector<6x8x8xf32>
    "tpu.trace_stop"() : () -> ()
    %cst_87 = arith.constant dense<0xFF800000> : vector<6x8xf32>
    %110 = vector.multi_reduction <maximumf>, %109, %cst_87 [2] : vector<6x8x8xf32> to vector<6x8xf32>
    %111 = vector.shape_cast %110 : vector<6x8xf32> to vector<6x8x1xf32>
    %112 = vector.broadcast %111 : vector<6x8x1xf32> to vector<6x8x8xf32>
    %113 = arith.subf %109, %112 : vector<6x8x8xf32>
    %114 = math.exp %113 : vector<6x8x8xf32>
    %cst_88 = arith.constant dense<0.000000e+00> : vector<6x8xf32>
    %115 = vector.multi_reduction <add>, %114, %cst_88 [2] : vector<6x8x8xf32> to vector<6x8xf32>
    %116 = vector.shape_cast %115 : vector<6x8xf32> to vector<6x8x1xf32>
    %117 = tpu.reciprocal %116 {approx = true} : vector<6x8x1xf32> -> vector<6x8x1xf32>
    %118 = vector.broadcast %117 : vector<6x8x1xf32> to vector<6x8x8xf32>
    %119 = arith.mulf %114, %118 : vector<6x8x8xf32>
    "tpu.trace_start"() <{level = 10 : i32, message = "bqk,bkd->bqd"}> : () -> ()
    %cst_89 = arith.constant dense<0.000000e+00> : vector<6x8x8xf32>
    %120 = tpu.matmul %119, %108, %cst_89 {dimension_numbers = #tpu.dot_dimension_numbers<[2], [1], [1], [2], [0, 0, 0, 1, 1, 2], [0], [0]>} : vector<6x8x8xf32>, vector<6x8x8xf32>, vector<6x8x8xf32> -> vector<6x8x8xf32>
    "tpu.trace_stop"() : () -> ()
    %121 = vector.shape_cast %120 : vector<6x8x8xf32> to vector<2x3x8x8xf32>
    %c0_90 = arith.constant 0 : index
    %c0_91 = arith.constant 0 : index
    %c0_92 = arith.constant 0 : index
    %c24_93 = arith.constant 24 : index
    %122 = vector.load %arg15[%c0_90, %c0_91, %c0_92, %c24_93] : memref<2x3x8x32xf32, #tpu.memory_space<vmem>>, vector<2x3x8x8xf32>
    tpu.vector_store %arg15[%c0_90, %c0_91, %c0_92, %c24_93], %121 {strides = array<i32>} : memref<2x3x8x32xf32, #tpu.memory_space<vmem>>, vector<2x3x8x8xf32>,
    %c0_94 = arith.constant 0 : index
    %c0_95 = arith.constant 0 : index
    %c0_96 = arith.constant 0 : index
    %c0_97 = arith.constant 0 : index
    %123 = vector.load %arg15[%c0_94, %c0_95, %c0_96, %c0_97] : memref<2x3x8x32xf32, #tpu.memory_space<vmem>>, vector<2x3x8x32xf32>
    %124 = vector.shape_cast %123 : vector<2x3x8x32xf32> to vector<48x32xf32>
    %c0_98 = arith.constant 0 : index
    %c0_99 = arith.constant 0 : index
    %125 = vector.load %arg9[%c0_98, %c0_99] : memref<32x32xf32, #tpu.memory_space<vmem>>, vector<32x32xf32>
    %cst_100 = arith.constant dense<0.000000e+00> : vector<48x32xf32>
    %126 = tpu.matmul %124, %125, %cst_100 {dimension_numbers = #tpu.dot_dimension_numbers<[1], [0], [0], [1], [0, 0, 1, 1], [], []>} : vector<48x32xf32>, vector<32x32xf32>, vector<48x32xf32> -> vector<48x32xf32>
    %c0_101 = arith.constant 0 : index
    %c0_102 = arith.constant 0 : index
    %127 = vector.load %arg10[%c0_101, %c0_102] : memref<1x32xf32, #tpu.memory_space<vmem>>, vector<1x32xf32>
    %128 = vector.broadcast %127 : vector<1x32xf32> to vector<48x32xf32>
    %129 = arith.addf %126, %128 : vector<48x32xf32>
    %c0_103 = arith.constant 0 : index
    %c0_104 = arith.constant 0 : index
    %130 = vector.load %arg11[%c0_103, %c0_104] : memref<32x128xf32, #tpu.memory_space<vmem>>, vector<32x128xf32>
    %cst_105 = arith.constant dense<0.000000e+00> : vector<48x128xf32>
    %131 = tpu.matmul %129, %130, %cst_105 {dimension_numbers = #tpu.dot_dimension_numbers<[1], [0], [0], [1], [0, 0, 1, 1], [], []>} : vector<48x32xf32>, vector<32x128xf32>, vector<48x128xf32> -> vector<48x128xf32>
    %c0_106 = arith.constant 0 : index
    %c0_107 = arith.constant 0 : index
    %132 = vector.load %arg12[%c0_106, %c0_107] : memref<1x128xf32, #tpu.memory_space<vmem>>, vector<1x128xf32>
    %133 = vector.broadcast %132 : vector<1x128xf32> to vector<48x128xf32>
    %134 = arith.addf %131, %133 : vector<48x128xf32>
    %135 = vector.shape_cast %134 : vector<48x128xf32> to vector<2x3x8x128xf32>
    %c0_108 = arith.constant 0 : index
    %c0_109 = arith.constant 0 : index
    %c0_110 = arith.constant 0 : index
    %c0_111 = arith.constant 0 : index
    %136 = vector.load %arg13[%c0_108, %c0_109, %c0_110, %c0_111] : memref<2x3x8x128xf32, #tpu.memory_space<vmem>>, vector<2x3x8x128xf32>
    tpu.vector_store %arg13[%c0_108, %c0_109, %c0_110, %c0_111], %135 {strides = array<i32>} : memref<2x3x8x128xf32, #tpu.memory_space<vmem>>, vector<2x3x8x128xf32>,
    return
  }
  func.func @transform_0(%arg0: i32) -> (i32, i32, i32, i32) {
    %c0_i32 = arith.constant 0 : i32
    %c0_i32_0 = arith.constant 0 : i32
    %c0_i32_1 = arith.constant 0 : i32
    %c0_i32_2 = arith.constant 0 : i32
    return %arg0, %c0_i32, %c0_i32_0, %c0_i32_1 : i32, i32, i32, i32
  }
  func.func @transform_1(%arg0: i32) -> (i32, i32, i32) {
    %c0_i32 = arith.constant 0 : i32
    %c0_i32_0 = arith.constant 0 : i32
    %c0_i32_1 = arith.constant 0 : i32
    return %arg0, %c0_i32, %c0_i32_0 : i32, i32, i32
  }
  func.func @transform_2(%arg0: i32) -> (i32, i32) {
    %c0_i32 = arith.constant 0 : i32
    %c0_i32_0 = arith.constant 0 : i32
    %c0_i32_1 = arith.constant 0 : i32
    return %c0_i32, %c0_i32_0 : i32, i32
  }
  func.func @transform_3(%arg0: i32) -> (i32, i32) {
    %c0_i32 = arith.constant 0 : i32
    %c0_i32_0 = arith.constant 0 : i32
    %c0_i32_1 = arith.constant 0 : i32
    return %c0_i32, %c0_i32_0 : i32, i32
  }
  func.func @transform_4(%arg0: i32) -> (i32, i32) {
    %c0_i32 = arith.constant 0 : i32
    %c0_i32_0 = arith.constant 0 : i32
    %c0_i32_1 = arith.constant 0 : i32
    return %c0_i32, %c0_i32_0 : i32, i32
  }
  func.func @transform_5(%arg0: i32) -> (i32, i32) {
    %c0_i32 = arith.constant 0 : i32
    %c0_i32_0 = arith.constant 0 : i32
    %c0_i32_1 = arith.constant 0 : i32
    return %c0_i32, %c0_i32_0 : i32, i32
  }
  func.func @transform_6(%arg0: i32) -> (i32, i32) {
    %c0_i32 = arith.constant 0 : i32
    %c0_i32_0 = arith.constant 0 : i32
    %c0_i32_1 = arith.constant 0 : i32
    return %c0_i32, %c0_i32_0 : i32, i32
  }
  func.func @transform_7(%arg0: i32) -> (i32, i32) {
    %c0_i32 = arith.constant 0 : i32
    %c0_i32_0 = arith.constant 0 : i32
    %c0_i32_1 = arith.constant 0 : i32
    return %c0_i32, %c0_i32_0 : i32, i32
  }
  func.func @transform_8(%arg0: i32) -> (i32, i32) {
    %c0_i32 = arith.constant 0 : i32
    %c0_i32_0 = arith.constant 0 : i32
    %c0_i32_1 = arith.constant 0 : i32
    return %c0_i32, %c0_i32_0 : i32, i32
  }
  func.func @transform_9(%arg0: i32) -> (i32, i32) {
    %c0_i32 = arith.constant 0 : i32
    %c0_i32_0 = arith.constant 0 : i32
    %c0_i32_1 = arith.constant 0 : i32
    return %c0_i32, %c0_i32_0 : i32, i32
  }
  func.func @transform_10(%arg0: i32) -> (i32, i32) {
    %c0_i32 = arith.constant 0 : i32
    %c0_i32_0 = arith.constant 0 : i32
    %c0_i32_1 = arith.constant 0 : i32
    return %c0_i32, %c0_i32_0 : i32, i32
  }
  func.func @transform_11(%arg0: i32) -> (i32, i32) {
    %c0_i32 = arith.constant 0 : i32
    %c0_i32_0 = arith.constant 0 : i32
    %c0_i32_1 = arith.constant 0 : i32
    return %c0_i32, %c0_i32_0 : i32, i32
  }
  func.func @transform_12(%arg0: i32) -> (i32, i32, i32, i32) {
    %c0_i32 = arith.constant 0 : i32
    %c0_i32_0 = arith.constant 0 : i32
    %c0_i32_1 = arith.constant 0 : i32
    %c0_i32_2 = arith.constant 0 : i32
    return %arg0, %c0_i32, %c0_i32_0, %c0_i32_1 : i32, i32, i32, i32
  }
}

</mosaic_0001>

<bundles_post_ra>
// kernel: tpu_custom_call.1
= control target key start
LH: loop header
LB: loop body
LE: loop exit
PB: predicated region body
PF: predicated region fallthrough
CT: control target
= control target key end

     0   :  { %s7132_s0 = inlined_call_operand.vmem [shape: f32[4,5,8,4], index: 0, kind: input, shape index: {}]   ;;  %s7133_s1 = inlined_call_operand.vmem [shape: f32[4,1,1], index: 1, kind: input, shape index: {}]   ;;  %s7134_s2 = inlined_call_operand.vmem [shape: f32[8,32], index: 2, kind: input, shape index: {}]   ;;  %s7135_s3 = inlined_call_operand.vmem [shape: f32[4,32], index: 3, kind: input, shape index: {}]   ;;  %s7136_s4 = inlined_call_operand.vmem [shape: f32[1,32], index: 4, kind: input, shape index: {}]   ;;  %s7137_s5 = inlined_call_operand.vmem [shape: f32[1,32], index: 5, kind: input, shape index: {}]   ;;  %s7138_s6 = inlined_call_operand.vmem [shape: f32[32,96], index: 6, kind: input, shape index: {}]   ;;  %s7139_s7 = inlined_call_operand.vmem [shape: f32[1,96], index: 7, kind: input, shape index: {}]   ;;  %s7140_s8 = inlined_call_operand.vmem [shape: f32[32,32], index: 8, kind: input, shape index: {}]   ;;  %s7141_s9 = inlined_call_operand.vmem [shape: f32[1,32], index: 9, kind: input, shape index: {}]   ;;  %s7142_s10 = inlined_call_operand.vmem [shape: f32[32,128], index: 10, kind: input, shape index: {}]   ;;  %s7143_s11 = inlined_call_operand.vmem [shape: f32[1,128], index: 11, kind: input, shape index: {}]   ;;  %s7144_s12 = inlined_call_operand.hbm [shape: f32[4,3,8,128], index: 12, kind: output, shape index: {}]  }
   0x1   :  { %7146 = sst [smem:[#allocation7_spill]] %s7132_s0 }
   0x2   :  { %7147 = sst [smem:[#allocation8_spill]] %s7133_s1 }
   0x3   :  { %17 = vsyncpa [#allocation5], 0 }
   0x4   :  { %19 = vsyncpa [#allocation5 + $0x1], 0  ;;  %s6368_s21 = smov 0   ;;  %s6370_s22 = smov 0  }
   0x5   :  { %s6372_s23 = smov 0   ;;  %s6374_s24 = smov 0  }
   0x6 LB: > { %s6389_s25 = sadd.s32 4294967295, %s6282_s24   ;;  %s5469_s26 = sadd.s32 4294967294, %s6282_s24   ;;  %s6282_s24 = sphi %s6374_s24, %s7156_s24   ;;  %s6278_s23 = sphi %s6372_s23, %s7155_s23   ;;  %s6274_s22 = sphi %s6370_s22, %s7154_s22   ;;  %s6270_s21 = sphi %s6368_s21, %s7153_s21  }
   0x7   : > { %s6393_s27 = sadd.s32 1, %s6282_s24   ;;  %s294_s28 = sadd.s32 1, %s6278_s23 }
   0x8   : > { %s291_s29 = ssub.s32 %s6282_s24, %s6393_s27  ;;  %p304_p0 = scmp.ne.s32.totalorder %s6278_s23, %s6274_s22 }
   0x9   : > { %p292_p1 = scmp.eq.s32.totalorder %s291_s29, 0  ;;  %p305_p2 = scmp.eq.s32.totalorder %s6389_s25, 1 }
   0xa   : > { %p310_p3 = scmp.ne.s32.totalorder %s6274_s22, %s6270_s21  ;;  %p311_p4 = scmp.eq.s32.totalorder %s5469_s26, 1 }
   0xb   : > { %s6404_s30 = scalar_select %p292_p1, %s6278_s23, %s294_s28  }
   0xc   : > { %p6406_p5 = por %p305_p2, %p304_p0  ;;  %p6410_p6 = por %p311_p4, %p310_p3 }
   0xd   : > { %p5472_p7 = scmp.ge.s32.totalorder %s6282_s24, 1  ;;  %p377_p8 = scmp.lt.s32.totalorder %s6282_s24, 3 }
   0xf   : > { %p378_p9 = pnand %p5472_p7, %p377_p8 }
  0x10   : > { %s5473_s17 = sshll.u32 (!%p378_p9), %s6389_s25, 1  ;;  %s7150_s1 = sld [smem:[#allocation8_spill]] (!%p378_p9) }
  0x11   : > { %381 = sbr.rel (%p378_p9) target bundleno = 3384 (0xd38), region = 68  ;;  %p425_p10 = scmp.lt.s32.totalorder (!%p378_p9), %s5473_s17, 3 }
  0x12   : > { %s7151_s0 = sld [smem:[#allocation7_spill]] (!%p378_p9)  ;;  %s6287_s29 = smov (!%p378_p9), 96  }
  0x13   : > { %s6289_s16 = smov (!%p378_p9), 88   ;;  %s6292_s19 = smov (!%p378_p9), 80  }
  0x14   : > { %s6293_s20 = smov (!%p378_p9), 112   ;;  %s6295_s28 = smov (!%p378_p9), 72  }
  0x16   : > { %v447_v0 = vld [vmem:[%s7135_s3] sm:$0xf]  ;;  %vm479_vm0 = vcmask 1043456   ;;  %v6284_v1 = vmov 0   ;;  %s7158_s17 = smov (!%p425_p10, %s5473_s17), 3  ;;  %vm448_vm1 = vcmask 31744   ;;  %v606_v18 = vlaneseq }
  0x17   : > { %5731 = vmatprep.subr.msk.mxu0 %vm479_vm0, %v447_v0  ;;  %6105 = vset.pattern.permute.xlu0 %v6284_v1  ;;  %s6046_s18 = smul.u32 40, %s7158_s17  ;;  %s434_s26 = scalar_lea.vmem %s7150_s1, %s7158_s17  ;;  %v764_v14 = vld [vmem:[%s7138_s6 + $0x18] sm:$0xff]  ;;  %v763_v15 = vld [vmem:[%s7138_s6 + $0x10] sm:$0xff]  ;;  %v762_v16 = vld [vmem:[%s7138_s6 + $0x8] sm:$0xff]  ;;  %vm772_vm2 = vcmask 261120   ;;  %vm918_vm3 = vcmask 785408  }
  0x18   : > { %5732 = vmatpush3.msk.msra.mxu0 %vm479_vm0, %v447_v0  ;;  %v598_v2 = vld [vmem:[%s434_s26] sm:$0x1]  ;;  %v599_v3 = vld [vmem:[%s434_s26 + $0x1] sm:$0x1]  ;;  %5748 = vmatprep.subr.mxu1 %v764_v14  ;;  %v607_v19 = vshrl.u32 %v606_v18, 7  ;;  %vm6286_vm4 = vmmov 0  }
  0x19   : > { %s429_s15 = scalar_lea.vmem %s7151_s0, %s6046_s18  ;;  %603 = vperm.xlu0 %6105, %v598_v2   ;;  %5749 = vmatpush3.msra.mxu1 %v764_v14  ;;  %v761_v17 = vld [vmem:[%s7138_s6] sm:$0xff]  ;;  %vm952_vm5 = vcmask 64512   ;;  %s6290_s17 = smov 120   ;;  %vm3002_vm6 = vcmask 130112   ;;  %vm4059_vm7 = vcmask 195712   ;;  %vm5116_vm8 = vcmask 261312  }
  0x1a   : > { %v437_v4 = vld [vmem:[%s429_s15] sm:$0xff]  ;;  %v438_v5 = vld [vmem:[%s429_s15 + $0x8] sm:$0xff]  ;;  %v439_v6 = vld [vmem:[%s429_s15 + $0x10] sm:$0xff]  ;;  %5750 = vmatprep.subr.mxu1 %v763_v15  ;;  %v608_v20 = vsub.s32 0, %v607_v19  ;;  %s6291_s18 = smov 56   ;;  %s6294_s26 = smov 48  }
  0x1b   : > { %5733 = vmatprep.mubr.msk.f32.mxu0 %vm448_vm1, %v437_v4  ;;  %v440_v7 = vld [vmem:[%s429_s15 + $0x18] sm:$0xff]  ;;  %v441_v8 = vld [vmem:[%s429_s15 + $0x20] sm:$0xff]  ;;  %v442_v9 = vld [vmem:[%s429_s15 + $0x28] sm:$0xff]  ;;  %5751 = vmatpush3.msra.mxu1 %v763_v15 }
  0x1c   : > { %5734 = vmatmul.mubr.msk.f32.vlgmr.msra.gmra.mxu0 %vm448_vm1, %v438_v5  ;;  %v443_v10 = vld [vmem:[%s429_s15 + $0x30] sm:$0xff]  ;;  %v444_v11 = vld [vmem:[%s429_s15 + $0x38] sm:$0xff]  ;;  %v445_v12 = vld [vmem:[%s429_s15 + $0x40] sm:$0xff]  ;;  %5752 = vmatprep.subr.mxu1 %v762_v16 }
  0x1d   : > { %5736 = vmatprep.mubr.msk.f32.mxu0 %vm448_vm1, %v439_v6  ;;  %612 = vperm.xlu0 %6105, %v599_v3   ;;  %v446_v13 = vld [vmem:[%s429_s15 + $0x48] sm:$0xff]  ;;  %v600_v23 = vld [vmem:[%s7136_s4] sm:$0x1]  ;;  %s6288_s15 = smov 64  }
  0x1e   : > { %5753 = vmatpush3.msra.mxu1 %v762_v16  ;;  %v6454_v29 = vld [vmem:[%s7137_s5] ss:$0 sm:$0xff] }
  0x1f   : > { %5754 = vmatprep.subr.mxu1 %v761_v17 }
  0x20   : > { %5737 = vmatmul.mubr.msk.f32.gmra.mxu0 %vm448_vm1, %v440_v7  ;;  %5755 = vmatpush3.msra.mxu1 %v761_v17 }
  0x21   : > { %5739 = vmatprep.mubr.msk.f32.mxu0 %vm448_vm1, %v441_v8 }
  0x24   : > { %5740 = vmatmul.mubr.msk.f32.gmra.mxu0 %vm448_vm1, %v442_v9 }
  0x25   : > { %5742 = vmatprep.mubr.msk.f32.mxu0 %vm448_vm1, %v443_v10 }
  0x28   : > { %5743 = vmatmul.mubr.msk.f32.gmra.mxu0 %vm448_vm1, %v444_v11 }
  0x29   : > { %5745 = vmatprep.mubr.msk.f32.mxu0 %vm448_vm1, %v445_v12 }
  0x2c   : > { %5746 = vmatmul.mubr.msk.f32.gmra.mxu0 %vm448_vm1, %v446_v13 }
  0x94   : > { %v604_v21 = vpop.permute.xlu0 %603 }
  0x95   : > { %v609_v22 = vrot.slane %v604_v21, %v608_v20 }
  0x97   : > { %v619_v24 = vmul.f32 %v609_v22, %v600_v23 }
  0x98   : > { %v613_v26 = vpop.permute.xlu0 %612 }
  0x99   : > { %v626_v25 = vrot.slane %v619_v24, %v608_v20  ;;  %v618_v27 = vrot.slane %v613_v26, %v608_v20 }
  0x9b   : > { %v620_v34 = vmul.f32 %v618_v27, %v600_v23 }
  0x9d   : > { %v630_v44 = vrot.slane %v620_v34, %v608_v20 }
  0xdc   : > { %v5735_v28 = vpop.f32.mrf.mxu0 }
  0xdd   : > { %v634_v30 = vadd.f32 %v5735_v28, %v626_v25 }
  0xde   : > { %v549_v31 = vpop.f32.mrf.mxu0 }
  0xdf   : > { %v6457_v32 = vadd.f32 %v6454_v29, %v634_v30  ;;  %v633_v33 = vadd.f32 %v626_v25, %v549_v31 }
  0xe0   : > { %v5738_v35 = vpop.f32.mrf.mxu0 }
  0xe1   : > { %v661_v36 = vmul.f32 %v6457_v32, %v6457_v32  ;;  %v6462_v37 = vadd.f32 %v6454_v29, %v633_v33  ;;  %v636_v38 = vadd.f32 %v5738_v35, %v626_v25 }
  0xe2   : > { %v559_v39 = vpop.f32.mrf.mxu0 }
  0xe3   : > { %v671_v40 = vmul.f32 %v661_v36, %v6457_v32  ;;  %v660_v41 = vmul.f32 %v6462_v37, %v6462_v37  ;;  %v6468_v42 = vadd.f32 %v6454_v29, %v636_v38  ;;  %v635_v43 = vadd.f32 %v626_v25, %v559_v39 }
  0xe4   : > { %v5741_v45 = vpop.f32.mrf.mxu0 }
  0xe5   : > { %v681_v46 = vmul.f32 0.044715, %v671_v40  ;;  %v670_v47 = vmul.f32 %v660_v41, %v6462_v37  ;;  %v663_v48 = vmul.f32 %v6468_v42, %v6468_v42  ;;  %v6474_v49 = vadd.f32 %v6454_v29, %v635_v43 }
  0xe6   : > { %v638_v50 = vadd.f32 %v5741_v45, %v630_v44  ;;  %v569_v51 = vpop.f32.mrf.mxu0 }
  0xe7   : > { %v691_v52 = vadd.f32 %v681_v46, %v6457_v32  ;;  %v680_v53 = vmul.f32 0.044715, %v670_v47  ;;  %v673_v54 = vmul.f32 %v663_v48, %v6468_v42  ;;  %v662_v55 = vmul.f32 %v6474_v49, %v6474_v49 }
  0xe8   : > { %v6481_v56 = vadd.f32 %v6454_v29, %v638_v50  ;;  %v637_v57 = vadd.f32 %v626_v25, %v569_v51  ;;  %v5744_v58 = vpop.f32.mrf.mxu0 }
  0xe9   : > { %v701_v59 = vmul.f32 0.7978846, %v691_v52  ;;  %v683_v60 = vmul.f32 0.044715, %v673_v54  ;;  %v672_v61 = vmul.f32 %v662_v55, %v6474_v49  ;;  %v640_v62 = vadd.f32 %v5744_v58, %v630_v44 }
  0xea   : > { %v665_v63 = vmul.f32 %v6481_v56, %v6481_v56  ;;  %v6487_v0 = vadd.f32 %v6454_v29, %v637_v57  ;;  %v579_v1 = vpop.f32.mrf.mxu0  ;;  %v690_v2 = vadd.f32 %v680_v53, %v6462_v37 }
  0xeb   : > { %6106 = vtanh.f32 %v701_v59  ;;  %v693_v3 = vadd.f32 %v683_v60, %v6468_v42  ;;  %v682_v4 = vmul.f32 0.044715, %v672_v61  ;;  %v6492_v5 = vadd.f32 %v6454_v29, %v640_v62 }
  0xec   : > { %v675_v6 = vmul.f32 %v665_v63, %v6481_v56  ;;  %v664_v7 = vmul.f32 %v6487_v0, %v6487_v0  ;;  %v639_v8 = vadd.f32 %v630_v44, %v579_v1  ;;  %v5747_v9 = vpop.f32.mrf.mxu0  ;;  %v700_v10 = vmul.f32 0.7978846, %v690_v2  ;;  %v750_v2 = vld [vmem:[%s7134_s2] sm:$0xff] }
  0xed   : > { %v703_v11 = vmul.f32 0.7978846, %v693_v3  ;;  %v692_v12 = vadd.f32 %v682_v4, %v6474_v49  ;;  %v667_v13 = vmul.f32 %v6492_v5, %v6492_v5  ;;  %v642_v14 = vadd.f32 %v5747_v9, %v630_v44 }
  0xee   : > { %v685_v15 = vmul.f32 0.044715, %v675_v6  ;;  %v674_v16 = vmul.f32 %v664_v7, %v6487_v0  ;;  %v6502_v17 = vadd.f32 %v6454_v29, %v639_v8  ;;  %v589_v18 = vpop.f32.mrf.mxu0  ;;  %6108 = vtanh.f32 %v700_v10 }
  0xef   : > { %6110 = vtanh.f32 %v703_v11  ;;  %v702_v19 = vmul.f32 0.7978846, %v692_v12  ;;  %v677_v20 = vmul.f32 %v667_v13, %v6492_v5  ;;  %v6506_v21 = vadd.f32 %v6454_v29, %v642_v14 }
  0xf0   : > { %v695_v22 = vadd.f32 %v685_v15, %v6481_v56  ;;  %v684_v23 = vmul.f32 0.044715, %v674_v16  ;;  %v666_v24 = vmul.f32 %v6502_v17, %v6502_v17  ;;  %v641_v25 = vadd.f32 %v630_v44, %v589_v18 }
  0xf1   : > { %6112 = vtanh.f32 %v702_v19  ;;  %v687_v26 = vmul.f32 0.044715, %v677_v20  ;;  %v669_v27 = vmul.f32 %v6506_v21, %v6506_v21 }
  0xf2   : > { %v705_v28 = vmul.f32 0.7978846, %v695_v22  ;;  %v694_v30 = vadd.f32 %v684_v23, %v6487_v0  ;;  %v676_v31 = vmul.f32 %v666_v24, %v6502_v17  ;;  %v6516_v33 = vadd.f32 %v6454_v29, %v641_v25 }
  0xf3   : > { %v697_v34 = vadd.f32 %v687_v26, %v6492_v5  ;;  %v679_v35 = vmul.f32 %v669_v27, %v6506_v21 }
  0xf4   : > { %6114 = vtanh.f32 %v705_v28  ;;  %v704_v36 = vmul.f32 0.7978846, %v694_v30  ;;  %v686_v38 = vmul.f32 0.044715, %v676_v31  ;;  %v668_v39 = vmul.f32 %v6516_v33, %v6516_v33 }
  0xf5   : > { %v707_v40 = vmul.f32 0.7978846, %v697_v34  ;;  %v689_v41 = vmul.f32 0.044715, %v679_v35 }
  0xf6   : > { %6116 = vtanh.f32 %v704_v36  ;;  %v696_v43 = vadd.f32 %v686_v38, %v6502_v17  ;;  %v678_v44 = vmul.f32 %v668_v39, %v6516_v33 }
  0xf7   : > { %6118 = vtanh.f32 %v707_v40  ;;  %v699_v29 = vadd.f32 %v689_v41, %v6506_v21 }
  0xf8   : > { %v6107_v45 = vpop.eup %6106  ;;  %v706_v46 = vmul.f32 0.7978846, %v696_v43  ;;  %v688_v47 = vmul.f32 0.044715, %v678_v44 }
  0xf9   : > { %v709_v48 = vmul.f32 0.7978846, %v699_v29  ;;  %v721_v50 = vadd.f32 1.0, %v6107_v45 }
  0xfa   : > { %6120 = vtanh.f32 %v706_v46  ;;  %v698_v51 = vadd.f32 %v688_v47, %v6516_v33 }
  0xfb   : > { %v6109_v52 = vpop.eup %6108  ;;  %6122 = vtanh.f32 %v709_v48  ;;  %v731_v53 = vmul.f32 0.5, %v721_v50 }
  0xfc   : > { %v6111_v54 = vpop.eup %6110  ;;  %v708_v55 = vmul.f32 0.7978846, %v698_v51  ;;  %v720_v57 = vadd.f32 1.0, %v6109_v52 }
  0xfd   : > { %v723_v58 = vadd.f32 1.0, %v6111_v54  ;;  %v741_v61 = vmul.f32 %v731_v53, %v6457_v32 }
  0xfe   : > { %v6113_v59 = vpop.eup %6112  ;;  %6124 = vtanh.f32 %v708_v55  ;;  %v730_v60 = vmul.f32 0.5, %v720_v57 }
  0xff   : > { %v722_v62 = vadd.f32 1.0, %v6113_v59  ;;  %v733_v63 = vmul.f32 0.5, %v723_v58  ;;  %v752_v9 = vadd.f32 %v750_v2, %v741_v61 }
 0x100   : > { %v740_v1 = vmul.f32 %v730_v60, %v6462_v37 }
 0x101   : > { %v6115_v3 = vpop.eup %6114  ;;  %v732_v4 = vmul.f32 0.5, %v722_v62  ;;  %v743_v11 = vmul.f32 %v733_v63, %v6468_v42 }
 0x102   : > { %v751_v6 = vadd.f32 %v750_v2, %v740_v1  ;;  %v725_v7 = vadd.f32 1.0, %v6115_v3 }
 0x103   : > { %v6117_v8 = vpop.eup %6116  ;;  %v742_v10 = vmul.f32 %v732_v4, %v6474_v49  ;;  %v754_v18 = vadd.f32 %v750_v2, %v743_v11 }
 0x104   : > { %v6119_v32 = vpop.eup %6118  ;;  %5756 = vmatprep.mubr.msk.f32.mxu1 %vm772_vm2, %v751_v6  ;;  %v724_v12 = vadd.f32 1.0, %v6117_v8  ;;  %v735_v37 = vmul.f32 0.5, %v725_v7 }
 0x105   : > { %5757 = vmatmul.mubr.msk.f32.vlgmr.msra.gmra.mxu1 %vm772_vm2, %v752_v9  ;;  %v753_v13 = vadd.f32 %v750_v2, %v742_v10  ;;  %v727_v14 = vadd.f32 1.0, %v6119_v32 }
 0x106   : > { %v734_v15 = vmul.f32 0.5, %v724_v12  ;;  %v745_v19 = vmul.f32 %v735_v37, %v6481_v56 }
 0x107   : > { %v6121_v16 = vpop.eup %6120  ;;  %5759 = vmatprep.mubr.msk.f32.mxu1 %vm772_vm2, %v753_v13  ;;  %v737_v20 = vmul.f32 0.5, %v727_v14 }
 0x108   : > { %v6123_v49 = vpop.eup %6122  ;;  %v744_v42 = vmul.f32 %v734_v15, %v6487_v0  ;;  %v726_v22 = vadd.f32 1.0, %v6121_v16  ;;  %v756_v27 = vadd.f32 %v750_v2, %v745_v19 }
 0x109   : > { %5760 = vmatmul.mubr.msk.f32.gmra.mxu1 %vm772_vm2, %v754_v18  ;;  %v729_v23 = vadd.f32 1.0, %v6123_v49  ;;  %v747_v28 = vmul.f32 %v737_v20, %v6492_v5 }
 0x10a   : > { %v755_v24 = vadd.f32 %v750_v2, %v744_v42  ;;  %v736_v25 = vmul.f32 0.5, %v726_v22 }
 0x10b   : > { %v6125_v26 = vpop.eup %6124  ;;  %v739_v30 = vmul.f32 0.5, %v729_v23  ;;  %v758_v35 = vadd.f32 %v750_v2, %v747_v28 }
 0x10c   : > { %5762 = vmatprep.mubr.msk.f32.mxu1 %vm772_vm2, %v755_v24  ;;  %v746_v31 = vmul.f32 %v736_v25, %v6502_v17  ;;  %v728_v56 = vadd.f32 1.0, %v6125_v26  ;;  %v6285_v17 = vmov 0.0  }
 0x10d   : > { %5763 = vmatmul.mubr.msk.f32.gmra.mxu1 %vm772_vm2, %v756_v27  ;;  %v749_v36 = vmul.f32 %v739_v30, %v6506_v21  ;;  %5771 = vmatprep.subr.mxu0 %v6285_v17  ;;  %v5488_v21 = vld [vmem:[%s7139_s7] ss:$0 sm:$0xff] }
 0x10e   : > { %v757_v34 = vadd.f32 %v750_v2, %v746_v31  ;;  %v738_v0 = vmul.f32 0.5, %v728_v56  ;;  %5781 = vmatprep.subr.mxu1 %v6285_v17  ;;  %5773 = vmatprep.mubr.msk.f32.mxu0 %vm6286_vm4, %v6285_v17 }
 0x10f   : > { %v760_v39 = vadd.f32 %v750_v2, %v749_v36 }
 0x110   : > { %5765 = vmatprep.mubr.msk.f32.mxu1 %vm772_vm2, %v757_v34  ;;  %v748_v38 = vmul.f32 %v738_v0, %v6516_v33 }
 0x111   : > { %5766 = vmatmul.mubr.msk.f32.gmra.mxu1 %vm772_vm2, %v758_v35 }
 0x112   : > { %v759_v5 = vadd.f32 %v750_v2, %v748_v38 }
 0x114   : > { %5768 = vmatprep.mubr.msk.f32.mxu1 %vm772_vm2, %v759_v5 }
 0x115   : > { %5769 = vmatmul.mubr.msk.f32.gmra.mxu1 %vm772_vm2, %v760_v39 }
 0x116   : > { %5783 = vmatprep.mubr.msk.f32.mxu1 %vm6286_vm4, %v6285_v17 }
 0x1c5   : > { %v5758_v40 = vpop.f32.mrf.mxu1 }
 0x1c6   : > { %v875_v33 = vadd.f32 %v5758_v40, %v5488_v21 }
 0x1c7   : > { %v869_v41 = vpop.f32.mrf.mxu1 }
 0x1c8   : > { %920 = vst.msk [vmem:[#allocation2 + $0x8] sm:$0xff] %vm918_vm3, %v875_v33  ;;  %v870_v43 = vadd.f32 %v5488_v21, %v869_v41 }
 0x1c9   : > { %v5761_v44 = vpop.f32.mrf.mxu1 }
 0x1ca   : > { %919 = vst.msk [vmem:[#allocation2] sm:$0xff] %vm918_vm3, %v870_v43  ;;  %v885_v29 = vadd.f32 %v5761_v44, %v5488_v21 }
 0x1cb   : > { %v879_v45 = vpop.f32.mrf.mxu1 }
 0x1cc   : > { %922 = vst.msk [vmem:[#allocation2 + $0x18] sm:$0xff] %vm918_vm3, %v885_v29  ;;  %v880_v46 = vadd.f32 %v5488_v21, %v879_v45 }
 0x1cd   : > { %v5764_v47 = vpop.f32.mrf.mxu1 }
 0x1ce   : > { %921 = vst.msk [vmem:[#allocation2 + $0x10] sm:$0xff] %vm918_vm3, %v880_v46  ;;  %v895_v48 = vadd.f32 %v5764_v47, %v5488_v21 }
 0x1cf   : > { %v889_v50 = vpop.f32.mrf.mxu1  ;;  %v6568_v59 = vld [vmem:[#allocation2 + $0x8] sm:$0xff] }
 0x1d0   : > { %924 = vst.msk [vmem:[#allocation2 + $0x28] sm:$0xff] %vm918_vm3, %v895_v48  ;;  %v890_v51 = vadd.f32 %v5488_v21, %v889_v50 }
 0x1d1   : > { %v5767_v52 = vpop.f32.mrf.mxu1  ;;  %v6563_v53 = vld [vmem:[#allocation2] sm:$0xff] }
 0x1d2   : > { %923 = vst.msk [vmem:[#allocation2 + $0x20] sm:$0xff] %vm918_vm3, %v890_v51  ;;  %v905_v54 = vadd.f32 %v5767_v52, %v5488_v21  ;;  %950 = vrot.lane.b32.xlu1 %v6563_v53, %s6287_s29 }
 0x1d3   : > { %v899_v55 = vpop.f32.mrf.mxu1  ;;  %v6595_v8 = vld [vmem:[#allocation2 + $0x18] sm:$0xff] }
 0x1d4   : > { %926 = vst.msk [vmem:[#allocation2 + $0x38] sm:$0xff] %vm918_vm3, %v905_v54  ;;  %v900_v57 = vadd.f32 %v5488_v21, %v899_v55 }
 0x1d5   : > { %v5770_v58 = vpop.f32.mrf.mxu1  ;;  %v6570_v60 = vld [vmem:[#allocation2 + $0x10] sm:$0xff] }
 0x1d6   : > { %925 = vst.msk [vmem:[#allocation2 + $0x30] sm:$0xff] %vm918_vm3, %v900_v57  ;;  %v915_v61 = vadd.f32 %v5770_v58, %v5488_v21  ;;  %1029 = vrot.lane.b32.xlu1 %v6568_v59, %s6287_s29  ;;  %1107 = vrot.lane.b32.xlu0 %v6570_v60, %s6287_s29 }
 0x1d7   : > { %v909_v62 = vpop.f32.mrf.mxu1  ;;  %v6576_v1 = vld [vmem:[#allocation2 + $0x28] sm:$0xff] }
 0x1d8   : > { %928 = vst.msk [vmem:[#allocation2 + $0x48] sm:$0xff] %vm918_vm3, %v915_v61  ;;  %v910_v63 = vadd.f32 %v5488_v21, %v909_v62 }
 0x1d9   : > { %v6633_v30 = vld [vmem:[#allocation2 + $0x20] sm:$0xff] }
 0x1da   : > { %927 = vst.msk [vmem:[#allocation2 + $0x40] sm:$0xff] %vm918_vm3, %v910_v63  ;;  %1185 = vrot.lane.b32.xlu1 %v6576_v1, %s6287_s29 }
 0x1db   : > { %v6580_v2 = vld [vmem:[#allocation2 + $0x38] sm:$0xff] }
 0x1dd   : > { %v6582_v3 = vld [vmem:[#allocation2 + $0x30] sm:$0xff] }
 0x1de   : > { %1341 = vrot.lane.b32.xlu1 %v6580_v2, %s6287_s29  ;;  %1263 = vrot.lane.b32.xlu0 %v6582_v3, %s6287_s29  ;;  %s6296_s29 = smov 104  }
 0x1df   : > { %v6639_v31 = vld [vmem:[#allocation2 + $0x48] sm:$0xff] }
 0x1e1   : > { %v6615_v32 = vld [vmem:[#allocation2 + $0x40] sm:$0xff] }
 0x244   : > { %v951_v4 = vpop.permute.xlu1 %950 }
 0x245   : > { %5772 = vmatpush3.xpose.msk.msra.mxu0 %vm952_vm5, %v951_v4 }
 0x246   : > { %5776 = vmatprep.subr.mxu0 %v6285_v17 }
 0x248   : > { %5774 = vmatmul.mubr.msk.f32.vlgmr.msra.gmra.mxu0 %vm952_vm5, %v6568_v59  ;;  %v1030_v6 = vpop.permute.xlu1 %1029  ;;  %v1108_v7 = vpop.permute.xlu0 %1107 }
 0x249   : > { %5777 = vmatpush3.xpose.msk.msra.mxu0 %vm952_vm5, %v1030_v6  ;;  %5782 = vmatpush3.xpose.msk.msra.mxu1 %vm952_vm5, %v1108_v7 }
 0x24a   : > { %5778 = vmatprep.mubr.msk.f32.mxu0 %vm6286_vm4, %v6285_v17  ;;  %5786 = vmatprep.subr.mxu0 %v6285_v17 }
 0x24b   : > { %5791 = vmatprep.subr.mxu1 %v6285_v17 }
 0x24c   : > { %5779 = vmatmul.mubr.msk.f32.vlgmr.msra.gmra.mxu0 %vm952_vm5, %v6570_v60  ;;  %v1186_v9 = vpop.permute.xlu1 %1185  ;;  %5784 = vmatmul.mubr.msk.f32.vlgmr.msra.gmra.mxu1 %vm952_vm5, %v6595_v8 }
 0x24d   : > { %5787 = vmatpush3.xpose.msk.msra.mxu0 %vm952_vm5, %v1186_v9  ;;  %5788 = vmatprep.mubr.msk.f32.mxu0 %vm6286_vm4, %v6285_v17 }
 0x24e   : > { %5796 = vmatprep.subr.mxu0 %v6285_v17  ;;  %5793 = vmatprep.mubr.msk.f32.mxu1 %vm6286_vm4, %v6285_v17 }
 0x250   : > { %v1342_v10 = vpop.permute.xlu1 %1341  ;;  %v1264_v11 = vpop.permute.xlu0 %1263  ;;  %5789 = vmatmul.mubr.msk.f32.vlgmr.msra.gmra.mxu0 %vm952_vm5, %v6582_v3 }
 0x251   : > { %5792 = vmatpush3.xpose.msk.msra.mxu1 %vm952_vm5, %v1264_v11  ;;  %5797 = vmatpush3.xpose.msk.msra.mxu0 %vm952_vm5, %v1342_v10 }
 0x252   : > { %5798 = vmatprep.mubr.msk.f32.mxu0 %vm6286_vm4, %v6285_v17  ;;  %5801 = vmatprep.subr.mxu1 %v6285_v17 }
 0x253   : > { %5806 = vmatprep.subr.mxu0 %v6285_v17 }
 0x254   : > { %5794 = vmatmul.mubr.msk.f32.vlgmr.msra.gmra.mxu1 %vm952_vm5, %v6580_v2  ;;  %5799 = vmatmul.mubr.msk.f32.vlgmr.msra.gmra.mxu0 %vm952_vm5, %v6615_v32 }
 0x255   : > { %5803 = vmatprep.mubr.msk.f32.mxu1 %vm6286_vm4, %v6285_v17  ;;  %5808 = vmatprep.mubr.msk.f32.mxu0 %vm6286_vm4, %v6285_v17 }
 0x308   : > { %v1024_v12 = vpop.f32.mrf.mxu0 }
 0x309   : > { %v1418_v37 = vsel %vm952_vm5, %v1024_v12, -inf }
 0x30a   : > { %1419 = vmax.xlane.f32.xlu0 %v1418_v37  ;;  %v5775_v13 = vpop.f32.mrf.mxu0 }
 0x30c   : > { %v1102_v14 = vpop.f32.mrf.mxu0  ;;  %v1180_v15 = vpop.f32.mrf.mxu1 }
 0x30d   : > { %v1421_v16 = vsel %vm952_vm5, %v1102_v14, -inf  ;;  %v1424_v18 = vsel %vm952_vm5, %v1180_v15, -inf }
 0x30e   : > { %1422 = vmax.xlane.f32.xlu1 %v1421_v16  ;;  %v5780_v19 = vpop.f32.mrf.mxu0  ;;  %1425 = vmax.xlane.f32.xlu0 %v1424_v18  ;;  %v5785_v20 = vpop.f32.mrf.mxu1 }
 0x310   : > { %v1258_v49 = vpop.f32.mrf.mxu0 }
 0x311   : > { %v1427_v42 = vsel %vm952_vm5, %v1258_v49, -inf }
 0x312   : > { %v5790_v22 = vpop.f32.mrf.mxu0  ;;  %1428 = vmax.xlane.f32.xlu0 %v1427_v42 }
 0x314   : > { %v1336_v23 = vpop.f32.mrf.mxu1  ;;  %v1414_v24 = vpop.f32.mrf.mxu0 }
 0x315   : > { %v1430_v25 = vsel %vm952_vm5, %v1336_v23, -inf  ;;  %v1433_v26 = vsel %vm952_vm5, %v1414_v24, -inf }
 0x316   : > { %1431 = vmax.xlane.f32.xlu1 %v1430_v25  ;;  %v5795_v27 = vpop.f32.mrf.mxu1  ;;  %1434 = vmax.xlane.f32.xlu0 %v1433_v26  ;;  %v5800_v28 = vpop.f32.mrf.mxu0 }
 0x327   : > { %1485 = vrot.lane.b32.xlu1 %v6570_v60, %s6288_s15 }
 0x32b   : > { %1639 = vrot.lane.b32.xlu1 %v6633_v30, %s6288_s15 }
 0x32c   : > { %1562 = vrot.lane.b32.xlu0 %v6595_v8, %s6288_s15 }
 0x32f   : > { %1716 = vrot.lane.b32.xlu1 %v6580_v2, %s6288_s15 }
 0x330   : > { %1793 = vrot.lane.b32.xlu0 %v6615_v32, %s6288_s15 }
 0x333   : > { %1870 = vrot.lane.b32.xlu1 %v6639_v31, %s6288_s15  ;;  %s6297_s15 = smov 40  }
 0x334   : > { %1974 = vrot.lane.b32.xlu0 %v6563_v53, %s6289_s16 }
 0x337   : > { %2054 = vrot.lane.b32.xlu1 %v6568_v59, %s6289_s16 }
 0x338   : > { %1971 = vrot.lane.b32.xlu0 %v6568_v59, %s6290_s17 }
 0x33b   : > { %2051 = vrot.lane.b32.xlu1 %v6570_v60, %s6290_s17 }
 0x33c   : > { %2134 = vrot.lane.b32.xlu0 %v6570_v60, %s6289_s16 }
 0x33f   : > { %2214 = vrot.lane.b32.xlu1 %v6576_v1, %s6289_s16 }
 0x393   : > { %v1420_v56 = vpop.xlane.xlu0 %1419 }
 0x394   : > { %v1436_v34 = vsub.f32 %v1024_v12, %v1420_v56 }
 0x396   : > { %v1442_v0 = vmul.f32 1.442695, %v1436_v34 }
 0x397   : > { %v1423_v35 = vpop.xlane.xlu1 %1422  ;;  %v1426_v36 = vpop.xlane.xlu0 %1425 }
 0x398   : > { %6126 = vpow2.f32 %v1442_v0  ;;  %v1437_v38 = vsub.f32 %v1102_v14, %v1423_v35  ;;  %v1438_v5 = vsub.f32 %v1180_v15, %v1426_v36 }
 0x39a   : > { %v1444_v39 = vmul.f32 1.442695, %v1437_v38  ;;  %v1446_v21 = vmul.f32 1.442695, %v1438_v5 }
 0x39b   : > { %v1429_v40 = vpop.xlane.xlu0 %1428 }
 0x39c   : > { %6128 = vpow2.f32 %v1444_v39  ;;  %v1439_v33 = vsub.f32 %v1258_v49, %v1429_v40 }
 0x39d   : > { %6130 = vpow2.f32 %v1446_v21 }
 0x39e   : > { %v1448_v41 = vmul.f32 1.442695, %v1439_v33 }
 0x39f   : > { %v1432_v43 = vpop.xlane.xlu1 %1431  ;;  %v1435_v44 = vpop.xlane.xlu0 %1434 }
 0x3a0   : > { %6132 = vpow2.f32 %v1448_v41  ;;  %v1440_v29 = vsub.f32 %v1336_v23, %v1432_v43  ;;  %v1441_v45 = vsub.f32 %v1414_v24, %v1435_v44 }
 0x3a2   : > { %v1450_v46 = vmul.f32 1.442695, %v1440_v29  ;;  %v1452_v47 = vmul.f32 1.442695, %v1441_v45 }
 0x3a3   : > { %v1486_v48 = vpop.permute.xlu1 %1485  ;;  %v1563_v50 = vpop.permute.xlu0 %1562 }
 0x3a4   : > { %6134 = vpow2.f32 %v1450_v46  ;;  %5802 = vmatpush3.msra.mxu1 %v1486_v48  ;;  %5807 = vmatpush3.msra.mxu0 %v1563_v50 }
 0x3a5   : > { %v6127_v51 = vpop.eup %6126  ;;  %6136 = vpow2.f32 %v1452_v47  ;;  %5811 = vmatprep.subr.mxu1 %v6285_v17  ;;  %5816 = vmatprep.subr.mxu0 %v6285_v17 }
 0x3a6   : > { %v1454_v52 = vsel %vm952_vm5, %v6127_v51, 0.0 }
 0x3a7   : > { %1455 = vadd.xlane.f32.xlu1 %v1454_v52  ;;  %v1640_v9 = vpop.permute.xlu1 %1639  ;;  %v1794_v12 = vpop.permute.xlu0 %1793 }
 0x3a9   : > { %v6129_v54 = vpop.eup %6128 }
 0x3aa   : > { %v6131_v55 = vpop.eup %6130  ;;  %v1457_v57 = vsel %vm952_vm5, %v6129_v54, 0.0 }
 0x3ab   : > { %v1460_v58 = vsel %vm952_vm5, %v6131_v55, 0.0  ;;  %1458 = vadd.xlane.f32.xlu0 %v1457_v57  ;;  %v1717_v10 = vpop.permute.xlu1 %1716  ;;  %v1975_v13 = vpop.permute.xlu0 %1974 }
 0x3ac   : > { %1461 = vadd.xlane.f32.xlu1 %v1460_v58 }
 0x3ad   : > { %v6133_v61 = vpop.eup %6132 }
 0x3ae   : > { %v1463_v62 = vsel %vm952_vm5, %v6133_v61, 0.0 }
 0x3af   : > { %1464 = vadd.xlane.f32.xlu0 %v1463_v62  ;;  %v1871_v11 = vpop.permute.xlu1 %1870  ;;  %v1972_v15 = vpop.permute.xlu0 %1971 }
 0x3b1   : > { %v6135_v63 = vpop.eup %6134 }
 0x3b2   : > { %v6137_v4 = vpop.eup %6136  ;;  %v1466_v6 = vsel %vm952_vm5, %v6135_v63, 0.0 }
 0x3b3   : > { %1467 = vadd.xlane.f32.xlu1 %v1466_v6  ;;  %v1469_v7 = vsel %vm952_vm5, %v6137_v4, 0.0  ;;  %v2055_v37 = vpop.permute.xlu1 %2054  ;;  %v2135_v18 = vpop.permute.xlu0 %2134 }
 0x3b4   : > { %1470 = vadd.xlane.f32.xlu0 %v1469_v7 }
 0x3b7   : > { %v2052_v14 = vpop.permute.xlu1 %2051 }
 0x3bb   : > { %v2215_v16 = vpop.permute.xlu1 %2214 }
 0x3c4   : > { %2211 = vrot.lane.b32.xlu1 %v6582_v3, %s6290_s17 }
 0x3c8   : > { %2374 = vrot.lane.b32.xlu1 %v6580_v2, %s6289_s16 }
 0x3ca   : > { %2131 = vrot.lane.b32.xlu0 %v6595_v8, %s6290_s17 }
 0x3cc   : > { %2371 = vrot.lane.b32.xlu1 %v6615_v32, %s6290_s17 }
 0x3ce   : > { %2294 = vrot.lane.b32.xlu0 %v6582_v3, %s6289_s16  ;;  %s7145_s16 = smov 8  }
 0x3d2   : > { %2291 = vrot.lane.b32.xlu0 %v6580_v2, %s6290_s17  ;;  %s6299_s17 = smov 16  }
 0x430   : > { %v1456_v19 = vpop.xlane.xlu1 %1455 }
 0x431   : > { %6138 = vrcp.f32 %v1456_v19 }
 0x434   : > { %v1459_v20 = vpop.xlane.xlu0 %1458 }
 0x435   : > { %v1462_v49 = vpop.xlane.xlu1 %1461  ;;  %6140 = vrcp.f32 %v1459_v20 }
 0x436   : > { %6142 = vrcp.f32 %v1462_v49 }
 0x438   : > { %v1465_v42 = vpop.xlane.xlu0 %1464 }
 0x439   : > { %6144 = vrcp.f32 %v1465_v42 }
 0x43c   : > { %v1468_v22 = vpop.xlane.xlu1 %1467 }
 0x43d   : > { %6146 = vrcp.f32 %v1468_v22  ;;  %v1471_v23 = vpop.xlane.xlu0 %1470 }
 0x43e   : > { %v6139_v24 = vpop.eup %6138  ;;  %6148 = vrcp.f32 %v1471_v23 }
 0x43f   : > { %v1478_v25 = vmul.f32 %v6139_v24, %v6127_v51 }
 0x440   : > { %v2212_v21 = vpop.permute.xlu1 %2211 }
 0x441   : > { %5804 = vmatmul.mubr.msk.f32.vlgmr.msra.gmra.mxu1 %vm952_vm5, %v1478_v25  ;;  %v2132_v5 = vpop.permute.xlu0 %2131 }
 0x442   : > { %v6141_v26 = vpop.eup %6140  ;;  %5812 = vmatpush3.msra.mxu1 %v1640_v9  ;;  %5813 = vmatprep.mubr.msk.f32.mxu1 %vm6286_vm4, %v6285_v17 }
 0x443   : > { %v6143_v27 = vpop.eup %6142  ;;  %5821 = vmatprep.subr.mxu1 %v6285_v17  ;;  %v1479_v28 = vmul.f32 %v6141_v26, %v6129_v54 }
 0x444   : > { %v1480_v56 = vmul.f32 %v6143_v27, %v6131_v55  ;;  %v2375_v33 = vpop.permute.xlu1 %2374 }
 0x445   : > { %5809 = vmatmul.mubr.msk.f32.vlgmr.msra.gmra.mxu0 %vm952_vm5, %v1479_v28  ;;  %v2295_v40 = vpop.permute.xlu0 %2294 }
 0x446   : > { %v6145_v34 = vpop.eup %6144  ;;  %5814 = vmatmul.mubr.msk.f32.vlgmr.msra.gmra.mxu1 %vm952_vm5, %v1480_v56  ;;  %5817 = vmatpush3.msra.mxu0 %v1717_v10 }
 0x447   : > { %5822 = vmatpush3.msra.mxu1 %v1794_v12  ;;  %5818 = vmatprep.mubr.msk.f32.mxu0 %vm6286_vm4, %v6285_v17  ;;  %v1481_v0 = vmul.f32 %v6145_v34, %v6133_v61 }
 0x448   : > { %5826 = vmatprep.subr.mxu0 %v6285_v17  ;;  %5823 = vmatprep.mubr.msk.f32.mxu1 %vm6286_vm4, %v6285_v17  ;;  %v2372_v43 = vpop.permute.xlu1 %2371 }
 0x449   : > { %5819 = vmatmul.mubr.msk.f32.vlgmr.msra.gmra.mxu0 %vm952_vm5, %v1481_v0  ;;  %5831 = vmatprep.subr.mxu1 %v6285_v17  ;;  %v2292_v41 = vpop.permute.xlu0 %2291 }
 0x44a   : > { %v6147_v35 = vpop.eup %6146  ;;  %5827 = vmatpush3.msra.mxu0 %v1871_v11  ;;  %5828 = vmatprep.mubr.msk.f32.mxu0 %vm6286_vm4, %v6285_v17 }
 0x44b   : > { %v6149_v36 = vpop.eup %6148  ;;  %5836 = vmatprep.subr.mxu0 %v6285_v17  ;;  %v1482_v38 = vmul.f32 %v6147_v35, %v6135_v63 }
 0x44c   : > { %v1483_v39 = vmul.f32 %v6149_v36, %v6137_v4 }
 0x44d   : > { %5824 = vmatmul.mubr.msk.f32.vlgmr.msra.gmra.mxu1 %vm952_vm5, %v1482_v38 }
 0x44e   : > { %5829 = vmatmul.mubr.msk.f32.vlgmr.msra.gmra.mxu0 %vm952_vm5, %v1483_v39  ;;  %5832 = vmatpush3.xpose.msk.msra.mxu1 %vm952_vm5, %v1975_v13 }
 0x44f   : > { %5837 = vmatpush3.xpose.msk.msra.mxu0 %vm952_vm5, %v2055_v37  ;;  %5833 = vmatprep.mubr.msk.f32.mxu1 %vm6286_vm4, %v6285_v17 }
 0x450   : > { %5838 = vmatprep.mubr.msk.f32.mxu0 %vm6286_vm4, %v6285_v17  ;;  %5841 = vmatprep.subr.mxu1 %v6285_v17 }
 0x451   : > { %5846 = vmatprep.subr.mxu0 %v6285_v17  ;;  %5834 = vmatmul.mubr.msk.f32.vlgmr.msra.gmra.mxu1 %vm952_vm5, %v1972_v15 }
 0x452   : > { %5839 = vmatmul.mubr.msk.f32.vlgmr.msra.gmra.mxu0 %vm952_vm5, %v2052_v14  ;;  %5842 = vmatpush3.xpose.msk.msra.mxu1 %vm952_vm5, %v2135_v18 }
 0x453   : > { %5847 = vmatpush3.xpose.msk.msra.mxu0 %vm952_vm5, %v2215_v16  ;;  %5843 = vmatprep.mubr.msk.f32.mxu1 %vm6286_vm4, %v6285_v17 }
 0x454   : > { %5848 = vmatprep.mubr.msk.f32.mxu0 %vm6286_vm4, %v6285_v17  ;;  %5851 = vmatprep.subr.mxu1 %v6285_v17 }
 0x455   : > { %5856 = vmatprep.subr.mxu0 %v6285_v17  ;;  %5844 = vmatmul.mubr.msk.f32.vlgmr.msra.gmra.mxu1 %vm952_vm5, %v2132_v5 }
 0x456   : > { %5849 = vmatmul.mubr.msk.f32.vlgmr.msra.gmra.mxu0 %vm952_vm5, %v2212_v21  ;;  %5852 = vmatpush3.xpose.msk.msra.mxu1 %vm952_vm5, %v2295_v40 }
 0x457   : > { %5857 = vmatpush3.xpose.msk.msra.mxu0 %vm952_vm5, %v2375_v33  ;;  %5853 = vmatprep.mubr.msk.f32.mxu1 %vm6286_vm4, %v6285_v17 }
 0x458   : > { %5858 = vmatprep.mubr.msk.f32.mxu0 %vm6286_vm4, %v6285_v17  ;;  %5861 = vmatprep.subr.mxu1 %v6285_v17 }
 0x459   : > { %5854 = vmatmul.mubr.msk.f32.vlgmr.msra.gmra.mxu1 %vm952_vm5, %v2292_v41  ;;  %5866 = vmatprep.subr.mxu0 %v6285_v17 }
 0x45a   : > { %5859 = vmatmul.mubr.msk.f32.vlgmr.msra.gmra.mxu0 %vm952_vm5, %v2372_v43  ;;  %5863 = vmatprep.mubr.msk.f32.mxu1 %vm6286_vm4, %v6285_v17 }
 0x45b   : > { %5868 = vmatprep.mubr.msk.f32.mxu0 %vm6286_vm4, %v6285_v17 }
 0x501   : > { %v1557_v44 = vpop.f32.mrf.mxu1 }
 0x502   : > { %1946 = vst.msk [vmem:[#allocation3] sm:$0xff] %vm952_vm5, %v1557_v44 }
 0x503   : > { %v5805_v29 = vpop.f32.mrf.mxu1 }
 0x505   : > { %v1634_v45 = vpop.f32.mrf.mxu0 }
 0x506   : > { %1947 = vst.msk [vmem:[#allocation3 + $0x8] sm:$0xff] %vm952_vm5, %v1634_v45  ;;  %v1711_v46 = vpop.f32.mrf.mxu1 }
 0x507   : > { %1948 = vst.msk [vmem:[#allocation3 + $0x10] sm:$0xff] %vm952_vm5, %v1711_v46  ;;  %v5810_v47 = vpop.f32.mrf.mxu0 }
 0x508   : > { %v5815_v48 = vpop.f32.mrf.mxu1 }
 0x509   : > { %v1788_v50 = vpop.f32.mrf.mxu0 }
 0x50a   : > { %1949 = vst.msk [vmem:[#allocation3 + $0x18] sm:$0xff] %vm952_vm5, %v1788_v50 }
 0x50b   : > { %v5820_v51 = vpop.f32.mrf.mxu0 }
 0x50d   : > { %v1865_v52 = vpop.f32.mrf.mxu1 }
 0x50e   : > { %1950 = vst.msk [vmem:[#allocation3 + $0x20] sm:$0xff] %vm952_vm5, %v1865_v52  ;;  %v1942_v54 = vpop.f32.mrf.mxu0 }
 0x50f   : > { %1951 = vst.msk [vmem:[#allocation3 + $0x28] sm:$0xff] %vm952_vm5, %v1942_v54  ;;  %v5825_v55 = vpop.f32.mrf.mxu1 }
 0x510   : > { %v5830_v57 = vpop.f32.mrf.mxu0 }
 0x511   : > { %v2046_v58 = vpop.f32.mrf.mxu1 }
 0x512   : > { %v2126_v61 = vpop.f32.mrf.mxu0  ;;  %v2450_v62 = vsel %vm952_vm5, %v2046_v58, -inf }
 0x513   : > { %2451 = vmax.xlane.f32.xlu0 %v2450_v62  ;;  %v5835_v63 = vpop.f32.mrf.mxu1  ;;  %v2453_v4 = vsel %vm952_vm5, %v2126_v61, -inf }
 0x514   : > { %2454 = vmax.xlane.f32.xlu1 %v2453_v4  ;;  %v5840_v6 = vpop.f32.mrf.mxu0 }
 0x515   : > { %v2206_v7 = vpop.f32.mrf.mxu1 }
 0x516   : > { %v2286_v9 = vpop.f32.mrf.mxu0  ;;  %v2456_v10 = vsel %vm952_vm5, %v2206_v7, -inf }
 0x517   : > { %2457 = vmax.xlane.f32.xlu0 %v2456_v10  ;;  %v5845_v11 = vpop.f32.mrf.mxu1  ;;  %v2459_v15 = vsel %vm952_vm5, %v2286_v9, -inf }
 0x518   : > { %v5850_v12 = vpop.f32.mrf.mxu0 }
 0x519   : > { %v2366_v37 = vpop.f32.mrf.mxu1 }
 0x51a   : > { %v2446_v13 = vpop.f32.mrf.mxu0  ;;  %v2462_v14 = vsel %vm952_vm5, %v2366_v37, -inf }
 0x51b   : > { %v5855_v16 = vpop.f32.mrf.mxu1  ;;  %2463 = vmax.xlane.f32.xlu1 %v2462_v14  ;;  %2460 = vmax.xlane.f32.xlu0 %v2459_v15  ;;  %v2465_v19 = vsel %vm952_vm5, %v2446_v13, -inf }
 0x51c   : > { %v5860_v18 = vpop.f32.mrf.mxu0 }
 0x51f   : > { %2466 = vmax.xlane.f32.xlu0 %v2465_v19 }
 0x52c   : > { %2517 = vrot.lane.b32.xlu1 %v6570_v60, %s6291_s18 }
 0x530   : > { %2671 = vrot.lane.b32.xlu1 %v6633_v30, %s6291_s18 }
 0x534   : > { %2748 = vrot.lane.b32.xlu1 %v6580_v2, %s6291_s18 }
 0x535   : > { %2594 = vrot.lane.b32.xlu0 %v6595_v8, %s6291_s18 }
 0x538   : > { %2902 = vrot.lane.b32.xlu1 %v6639_v31, %s6291_s18 }
 0x539   : > { %2825 = vrot.lane.b32.xlu0 %v6615_v32, %s6291_s18  ;;  %s6300_s18 = smov 24  }
 0x53c   : > { %3111 = vrot.lane.b32.xlu1 %v6568_v59, %s6292_s19 }
 0x53d   : > { %3031 = vrot.lane.b32.xlu0 %v6563_v53, %s6292_s19 }
 0x540   : > { %3108 = vrot.lane.b32.xlu1 %v6570_v60, %s6293_s20 }
 0x541   : > { %3028 = vrot.lane.b32.xlu0 %v6568_v59, %s6293_s20 }
 0x544   : > { %3271 = vrot.lane.b32.xlu1 %v6576_v1, %s6292_s19 }
 0x545   : > { %3191 = vrot.lane.b32.xlu0 %v6570_v60, %s6292_s19 }
 0x59c   : > { %v2452_v20 = vpop.xlane.xlu0 %2451 }
 0x59d   : > { %v2468_v49 = vsub.f32 %v2046_v58, %v2452_v20  ;;  %v2455_v42 = vpop.xlane.xlu1 %2454 }
 0x59e   : > { %v2469_v22 = vsub.f32 %v2126_v61, %v2455_v42 }
 0x59f   : > { %v2474_v23 = vmul.f32 1.442695, %v2468_v49 }
 0x5a0   : > { %v2476_v24 = vmul.f32 1.442695, %v2469_v22  ;;  %v2458_v25 = vpop.xlane.xlu0 %2457 }
 0x5a1   : > { %6150 = vpow2.f32 %v2474_v23  ;;  %v2470_v26 = vsub.f32 %v2206_v7, %v2458_v25 }
 0x5a2   : > { %6152 = vpow2.f32 %v2476_v24 }
 0x5a3   : > { %v2478_v27 = vmul.f32 1.442695, %v2470_v26 }
 0x5a4   : > { %v2464_v28 = vpop.xlane.xlu1 %2463  ;;  %v2461_v56 = vpop.xlane.xlu0 %2460 }
 0x5a5   : > { %6154 = vpow2.f32 %v2478_v27  ;;  %v2472_v34 = vsub.f32 %v2366_v37, %v2464_v28  ;;  %v2471_v0 = vsub.f32 %v2286_v9, %v2461_v56 }
 0x5a7   : > { %v2482_v35 = vmul.f32 1.442695, %v2472_v34  ;;  %v2480_v36 = vmul.f32 1.442695, %v2471_v0 }
 0x5a8   : > { %v2518_v38 = vpop.permute.xlu1 %2517  ;;  %v2467_v5 = vpop.xlane.xlu0 %2466 }
 0x5a9   : > { %6156 = vpow2.f32 %v2482_v35  ;;  %v2473_v39 = vsub.f32 %v2446_v13, %v2467_v5  ;;  %5862 = vmatpush3.msra.mxu1 %v2518_v38 }
 0x5aa   : > { %6158 = vpow2.f32 %v2480_v36  ;;  %5871 = vmatprep.subr.mxu1 %v6285_v17 }
 0x5ab   : > { %v2484_v21 = vmul.f32 1.442695, %v2473_v39 }
 0x5ac   : > { %v2595_v40 = vpop.permute.xlu0 %2594  ;;  %v2672_v54 = vpop.permute.xlu1 %2671 }
 0x5ad   : > { %6160 = vpow2.f32 %v2484_v21  ;;  %5867 = vmatpush3.msra.mxu0 %v2595_v40 }
 0x5ae   : > { %v6151_v33 = vpop.eup %6150  ;;  %5876 = vmatprep.subr.mxu0 %v6285_v17 }
 0x5af   : > { %v6153_v41 = vpop.eup %6152  ;;  %v2486_v43 = vsel %vm952_vm5, %v6151_v33, 0.0 }
 0x5b0   : > { %2487 = vadd.xlane.f32.xlu1 %v2486_v43  ;;  %v2489_v44 = vsel %vm952_vm5, %v6153_v41, 0.0  ;;  %v2749_v55 = vpop.permute.xlu1 %2748  ;;  %v2826_v58 = vpop.permute.xlu0 %2825 }
 0x5b1   : > { %2490 = vadd.xlane.f32.xlu0 %v2489_v44 }
 0x5b2   : > { %v6155_v29 = vpop.eup %6154 }
 0x5b3   : > { %v2492_v45 = vsel %vm952_vm5, %v6155_v29, 0.0 }
 0x5b4   : > { %2493 = vadd.xlane.f32.xlu1 %v2492_v45  ;;  %v2903_v57 = vpop.permute.xlu1 %2902  ;;  %v3032_v62 = vpop.permute.xlu0 %3031 }
 0x5b6   : > { %v6157_v46 = vpop.eup %6156 }
 0x5b7   : > { %v6159_v47 = vpop.eup %6158  ;;  %v2498_v48 = vsel %vm952_vm5, %v6157_v46, 0.0 }
 0x5b8   : > { %2499 = vadd.xlane.f32.xlu1 %v2498_v48  ;;  %v2495_v50 = vsel %vm952_vm5, %v6159_v47, 0.0  ;;  %v3112_v61 = vpop.permute.xlu1 %3111  ;;  %v3029_v4 = vpop.permute.xlu0 %3028 }
 0x5b9   : > { %2496 = vadd.xlane.f32.xlu0 %v2495_v50 }
 0x5ba   : > { %v6161_v51 = vpop.eup %6160 }
 0x5bb   : > { %v2501_v52 = vsel %vm952_vm5, %v6161_v51, 0.0 }
 0x5bc   : > { %v3109_v63 = vpop.permute.xlu1 %3108  ;;  %v3192_v7 = vpop.permute.xlu0 %3191 }
 0x5bd   : > { %2502 = vadd.xlane.f32.xlu0 %v2501_v52 }
 0x5c0   : > { %v3272_v6 = vpop.permute.xlu1 %3271 }
 0x5c9   : > { %3268 = vrot.lane.b32.xlu1 %v6582_v3, %s6293_s20 }
 0x5cd   : > { %3431 = vrot.lane.b32.xlu1 %v6580_v2, %s6292_s19 }
 0x5d1   : > { %3428 = vrot.lane.b32.xlu1 %v6615_v32, %s6293_s20 }
 0x5d3   : > { %3188 = vrot.lane.b32.xlu0 %v6595_v8, %s6293_s20 }
 0x5d7   : > { %3351 = vrot.lane.b32.xlu0 %v6582_v3, %s6292_s19  ;;  %s6047_s19 = smul.u32 768, %s6389_s25 }
 0x5db   : > { %3348 = vrot.lane.b32.xlu0 %v6580_v2, %s6293_s20 }
 0x639   : > { %v2488_v9 = vpop.xlane.xlu1 %2487 }
 0x63a   : > { %6162 = vrcp.f32 %v2488_v9  ;;  %v2491_v10 = vpop.xlane.xlu0 %2490 }
 0x63b   : > { %6164 = vrcp.f32 %v2491_v10 }
 0x63d   : > { %v2494_v11 = vpop.xlane.xlu1 %2493 }
 0x63e   : > { %6166 = vrcp.f32 %v2494_v11 }
 0x641   : > { %v2500_v3 = vpop.xlane.xlu1 %2499 }
 0x642   : > { %6168 = vrcp.f32 %v2500_v3  ;;  %v2497_v12 = vpop.xlane.xlu0 %2496 }
 0x643   : > { %6170 = vrcp.f32 %v2497_v12 }
 0x645   : > { %v3269_v26 = vpop.permute.xlu1 %3268 }
 0x646   : > { %v2503_v37 = vpop.xlane.xlu0 %2502 }
 0x647   : > { %v6163_v13 = vpop.eup %6162  ;;  %6172 = vrcp.f32 %v2503_v37 }
 0x648   : > { %v6165_v14 = vpop.eup %6164  ;;  %v2510_v15 = vmul.f32 %v6163_v13, %v6151_v33 }
 0x649   : > { %v2511_v16 = vmul.f32 %v6165_v14, %v6153_v41  ;;  %v3432_v28 = vpop.permute.xlu1 %3431 }
 0x64a   : > { %5864 = vmatmul.mubr.msk.f32.vlgmr.msra.gmra.mxu1 %vm952_vm5, %v2510_v15  ;;  %v3189_v22 = vpop.permute.xlu0 %3188 }
 0x64b   : > { %v6167_v18 = vpop.eup %6166  ;;  %5869 = vmatmul.mubr.msk.f32.vlgmr.msra.gmra.mxu0 %vm952_vm5, %v2511_v16  ;;  %5872 = vmatpush3.msra.mxu1 %v2672_v54 }
 0x64c   : > { %5877 = vmatpush3.msra.mxu0 %v2749_v55  ;;  %5873 = vmatprep.mubr.msk.f32.mxu1 %vm6286_vm4, %v6285_v17  ;;  %v2512_v19 = vmul.f32 %v6167_v18, %v6155_v29 }
 0x64d   : > { %5881 = vmatprep.subr.mxu1 %v6285_v17  ;;  %5878 = vmatprep.mubr.msk.f32.mxu0 %vm6286_vm4, %v6285_v17  ;;  %v3429_v34 = vpop.permute.xlu1 %3428 }
 0x64e   : > { %5874 = vmatmul.mubr.msk.f32.vlgmr.msra.gmra.mxu1 %vm952_vm5, %v2512_v19  ;;  %5886 = vmatprep.subr.mxu0 %v6285_v17  ;;  %v3352_v27 = vpop.permute.xlu0 %3351 }
 0x64f   : > { %v6169_v20 = vpop.eup %6168  ;;  %5882 = vmatpush3.msra.mxu1 %v2826_v58  ;;  %5883 = vmatprep.mubr.msk.f32.mxu1 %vm6286_vm4, %v6285_v17 }
 0x650   : > { %v6171_v49 = vpop.eup %6170  ;;  %5891 = vmatprep.subr.mxu1 %v6285_v17  ;;  %v2514_v42 = vmul.f32 %v6169_v20, %v6157_v46 }
 0x651   : > { %v2513_v23 = vmul.f32 %v6171_v49, %v6159_v47 }
 0x652   : > { %5884 = vmatmul.mubr.msk.f32.vlgmr.msra.gmra.mxu1 %vm952_vm5, %v2514_v42  ;;  %v3349_v56 = vpop.permute.xlu0 %3348 }
 0x653   : > { %5879 = vmatmul.mubr.msk.f32.vlgmr.msra.gmra.mxu0 %vm952_vm5, %v2513_v23  ;;  %5892 = vmatpush3.xpose.msk.msra.mxu1 %vm952_vm5, %v3032_v62 }
 0x654   : > { %v6173_v24 = vpop.eup %6172  ;;  %5887 = vmatpush3.msra.mxu0 %v2903_v57  ;;  %5888 = vmatprep.mubr.msk.f32.mxu0 %vm6286_vm4, %v6285_v17 }
 0x655   : > { %5893 = vmatprep.mubr.msk.f32.mxu1 %vm6286_vm4, %v6285_v17  ;;  %5896 = vmatprep.subr.mxu0 %v6285_v17  ;;  %v2515_v25 = vmul.f32 %v6173_v24, %v6161_v51 }
 0x656   : > { %5901 = vmatprep.subr.mxu1 %v6285_v17  ;;  %5894 = vmatmul.mubr.msk.f32.vlgmr.msra.gmra.mxu1 %vm952_vm5, %v3029_v4 }
 0x657   : > { %5889 = vmatmul.mubr.msk.f32.vlgmr.msra.gmra.mxu0 %vm952_vm5, %v2515_v25  ;;  %5902 = vmatpush3.xpose.msk.msra.mxu1 %vm952_vm5, %v3192_v7 }
 0x658   : > { %5897 = vmatpush3.xpose.msk.msra.mxu0 %vm952_vm5, %v3112_v61  ;;  %5898 = vmatprep.mubr.msk.f32.mxu0 %vm6286_vm4, %v6285_v17 }
 0x659   : > { %5903 = vmatprep.mubr.msk.f32.mxu1 %vm6286_vm4, %v6285_v17  ;;  %5906 = vmatprep.subr.mxu0 %v6285_v17 }
 0x65a   : > { %5911 = vmatprep.subr.mxu1 %v6285_v17  ;;  %5904 = vmatmul.mubr.msk.f32.vlgmr.msra.gmra.mxu1 %vm952_vm5, %v3189_v22 }
 0x65b   : > { %5899 = vmatmul.mubr.msk.f32.vlgmr.msra.gmra.mxu0 %vm952_vm5, %v3109_v63  ;;  %5912 = vmatpush3.xpose.msk.msra.mxu1 %vm952_vm5, %v3352_v27 }
 0x65c   : > { %5907 = vmatpush3.xpose.msk.msra.mxu0 %vm952_vm5, %v3272_v6  ;;  %5908 = vmatprep.mubr.msk.f32.mxu0 %vm6286_vm4, %v6285_v17 }
 0x65d   : > { %5913 = vmatprep.mubr.msk.f32.mxu1 %vm6286_vm4, %v6285_v17  ;;  %5916 = vmatprep.subr.mxu0 %v6285_v17 }
 0x65e   : > { %5914 = vmatmul.mubr.msk.f32.vlgmr.msra.gmra.mxu1 %vm952_vm5, %v3349_v56  ;;  %5921 = vmatprep.subr.mxu1 %v6285_v17 }
 0x65f   : > { %5909 = vmatmul.mubr.msk.f32.vlgmr.msra.gmra.mxu0 %vm952_vm5, %v3269_v26  ;;  %5923 = vmatprep.mubr.msk.f32.mxu1 %vm6286_vm4, %v6285_v17 }
 0x660   : > { %5917 = vmatpush3.xpose.msk.msra.mxu0 %vm952_vm5, %v3432_v28  ;;  %5918 = vmatprep.mubr.msk.f32.mxu0 %vm6286_vm4, %v6285_v17 }
 0x661   : > { %5926 = vmatprep.subr.mxu0 %v6285_v17 }
 0x663   : > { %5919 = vmatmul.mubr.msk.f32.vlgmr.msra.gmra.mxu0 %vm952_vm5, %v3429_v34 }
 0x664   : > { %5928 = vmatprep.mubr.msk.f32.mxu0 %vm6286_vm4, %v6285_v17 }
 0x70a   : > { %v6828_v0 = vpop.f32.mrf.mxu1 }
 0x70b   : > { %v6830_v35 = vpop.f32.mrf.mxu0 }
 0x70c   : > { %v5865_v36 = vpop.f32.mrf.mxu1 }
 0x70d   : > { %v5870_v38 = vpop.f32.mrf.mxu0  ;;  %v4069_v36 = vld [vmem:[#allocation2 + $0x30] sm:$0xff] }
 0x70e   : > { %v6832_v5 = vpop.f32.mrf.mxu1  ;;  %v6876_v38 = vld [vmem:[#allocation2 + $0x38] sm:$0xff] }
 0x710   : > { %v5875_v39 = vpop.f32.mrf.mxu1 }
 0x711   : > { %v6882_v39 = vld [vmem:[#allocation2 + $0x18] sm:$0xff] }
 0x712   : > { %v6834_v21 = vpop.f32.mrf.mxu1 }
 0x713   : > { %v6836_v40 = vpop.f32.mrf.mxu0 }
 0x714   : > { %v5885_v33 = vpop.f32.mrf.mxu1 }
 0x715   : > { %v5880_v41 = vpop.f32.mrf.mxu0 }
 0x716   : > { %v3103_v43 = vpop.f32.mrf.mxu1 }
 0x717   : > { %v6838_v44 = vpop.f32.mrf.mxu0  ;;  %v3507_v29 = vsel %vm952_vm5, %v3103_v43, -inf }
 0x718   : > { %3508 = vmax.xlane.f32.xlu0 %v3507_v29  ;;  %v5895_v45 = vpop.f32.mrf.mxu1 }
 0x719   : > { %v5890_v46 = vpop.f32.mrf.mxu0 }
 0x71a   : > { %v3263_v47 = vpop.f32.mrf.mxu1 }
 0x71b   : > { %v3183_v48 = vpop.f32.mrf.mxu0  ;;  %v3513_v50 = vsel %vm952_vm5, %v3263_v47, -inf }
 0x71c   : > { %3514 = vmax.xlane.f32.xlu0 %v3513_v50  ;;  %v5905_v51 = vpop.f32.mrf.mxu1  ;;  %v3510_v52 = vsel %vm952_vm5, %v3183_v48, -inf }
 0x71d   : > { %3511 = vmax.xlane.f32.xlu1 %v3510_v52  ;;  %v5900_v54 = vpop.f32.mrf.mxu0 }
 0x71e   : > { %v3423_v55 = vpop.f32.mrf.mxu1 }
 0x71f   : > { %v3343_v57 = vpop.f32.mrf.mxu0  ;;  %v3519_v58 = vsel %vm952_vm5, %v3423_v55, -inf }
 0x720   : > { %v5915_v61 = vpop.f32.mrf.mxu1  ;;  %v3516_v62 = vsel %vm952_vm5, %v3343_v57, -inf }
 0x721   : > { %3520 = vmax.xlane.f32.xlu1 %v3519_v58  ;;  %3517 = vmax.xlane.f32.xlu0 %v3516_v62  ;;  %v5910_v63 = vpop.f32.mrf.mxu0 }
 0x723   : > { %v3503_v4 = vpop.f32.mrf.mxu0 }
 0x724   : > { %v3522_v6 = vsel %vm952_vm5, %v3503_v4, -inf }
 0x725   : > { %3523 = vmax.xlane.f32.xlu0 %v3522_v6  ;;  %v5920_v7 = vpop.f32.mrf.mxu0 }
 0x732   : > { %3574 = vrot.lane.b32.xlu1 %v6570_v60, %s6294_s26 }
 0x736   : > { %3728 = vrot.lane.b32.xlu1 %v6633_v30, %s6294_s26 }
 0x73a   : > { %3805 = vrot.lane.b32.xlu1 %v6580_v2, %s6294_s26 }
 0x73b   : > { %3651 = vrot.lane.b32.xlu0 %v6595_v8, %s6294_s26 }
 0x73e   : > { %3959 = vrot.lane.b32.xlu1 %v6639_v31, %s6294_s26 }
 0x73f   : > { %3882 = vrot.lane.b32.xlu0 %v6615_v32, %s6294_s26  ;;  %s421_s26 = sand.u32 1, %s6274_s22  }
 0x742   : > { %4168 = vrot.lane.b32.xlu1 %v6568_v59, %s6295_s28 }
 0x743   : > { %4088 = vrot.lane.b32.xlu0 %v6563_v53, %s6295_s28 }
 0x746   : > { %4165 = vrot.lane.b32.xlu1 %v6570_v60, %s6296_s29 }
 0x747   : > { %4085 = vrot.lane.b32.xlu0 %v6568_v59, %s6296_s29 }
 0x74a   : > { %4328 = vrot.lane.b32.xlu1 %v6576_v1, %s6295_s28 }
 0x74b   : > { %4248 = vrot.lane.b32.xlu0 %v6570_v60, %s6295_s28 }
 0x7a1   : > { %v3509_v2 = vpop.xlane.xlu0 %3508 }
 0x7a2   : > { %v3525_v8 = vsub.f32 %v3103_v43, %v3509_v2 }
 0x7a4   : > { %v3531_v30 = vmul.f32 1.442695, %v3525_v8 }
 0x7a5   : > { %v3515_v31 = vpop.xlane.xlu0 %3514 }
 0x7a6   : > { %6174 = vpow2.f32 %v3531_v30  ;;  %v3527_v9 = vsub.f32 %v3263_v47, %v3515_v31  ;;  %v3512_v53 = vpop.xlane.xlu1 %3511 }
 0x7a7   : > { %v3526_v10 = vsub.f32 %v3183_v48, %v3512_v53 }
 0x7a8   : > { %v3535_v11 = vmul.f32 1.442695, %v3527_v9 }
 0x7a9   : > { %v3533_v3 = vmul.f32 1.442695, %v3526_v10 }
 0x7aa   : > { %6176 = vpow2.f32 %v3535_v11  ;;  %v3521_v12 = vpop.xlane.xlu1 %3520  ;;  %v3518_v37 = vpop.xlane.xlu0 %3517 }
 0x7ab   : > { %6178 = vpow2.f32 %v3533_v3  ;;  %v3529_v59 = vsub.f32 %v3423_v55, %v3521_v12  ;;  %v3528_v13 = vsub.f32 %v3343_v57, %v3518_v37 }
 0x7ad   : > { %v3539_v1 = vmul.f32 1.442695, %v3529_v59  ;;  %v3537_v14 = vmul.f32 1.442695, %v3528_v13 }
 0x7ae   : > { %v3575_v15 = vpop.permute.xlu1 %3574  ;;  %v3524_v60 = vpop.xlane.xlu0 %3523 }
 0x7af   : > { %6180 = vpow2.f32 %v3539_v1  ;;  %v3530_v16 = vsub.f32 %v3503_v4, %v3524_v60  ;;  %5922 = vmatpush3.msra.mxu1 %v3575_v15 }
 0x7b0   : > { %6182 = vpow2.f32 %v3537_v14  ;;  %5931 = vmatprep.subr.mxu1 %v6285_v17 }
 0x7b1   : > { %v3541_v18 = vmul.f32 1.442695, %v3530_v16 }
 0x7b2   : > { %v3652_v19 = vpop.permute.xlu0 %3651  ;;  %v3729_v33 = vpop.permute.xlu1 %3728 }
 0x7b3   : > { %v6175_v20 = vpop.eup %6174  ;;  %6184 = vpow2.f32 %v3541_v18  ;;  %5927 = vmatpush3.msra.mxu0 %v3652_v19 }
 0x7b4   : > { %v3543_v49 = vsel %vm952_vm5, %v6175_v20, 0.0  ;;  %5936 = vmatprep.subr.mxu0 %v6285_v17 }
 0x7b5   : > { %3544 = vadd.xlane.f32.xlu1 %v3543_v49 }
 0x7b6   : > { %v3806_v41 = vpop.permute.xlu1 %3805  ;;  %v3883_v29 = vpop.permute.xlu0 %3882 }
 0x7b7   : > { %v6177_v42 = vpop.eup %6176 }
 0x7b8   : > { %v6179_v22 = vpop.eup %6178  ;;  %v3549_v23 = vsel %vm952_vm5, %v6177_v42, 0.0 }
 0x7b9   : > { %3550 = vadd.xlane.f32.xlu1 %v3549_v23  ;;  %v3546_v24 = vsel %vm952_vm5, %v6179_v22, 0.0 }
 0x7ba   : > { %3547 = vadd.xlane.f32.xlu0 %v3546_v24  ;;  %v3960_v43 = vpop.permute.xlu1 %3959  ;;  %v4089_v46 = vpop.permute.xlu0 %4088 }
 0x7bc   : > { %v6181_v25 = vpop.eup %6180 }
 0x7bd   : > { %v6183_v26 = vpop.eup %6182  ;;  %v3555_v27 = vsel %vm952_vm5, %v6181_v25, 0.0 }
 0x7be   : > { %3556 = vadd.xlane.f32.xlu1 %v3555_v27  ;;  %v3552_v28 = vsel %vm952_vm5, %v6183_v26, 0.0  ;;  %v4169_v45 = vpop.permute.xlu1 %4168  ;;  %v4086_v48 = vpop.permute.xlu0 %4085 }
 0x7bf   : > { %3553 = vadd.xlane.f32.xlu0 %v3552_v28 }
 0x7c0   : > { %v6871_v56 = vpop.eup %6184 }
 0x7c1   : > { %v3558_v34 = vsel %vm952_vm5, %v6871_v56, 0.0 }
 0x7c2   : > { %v4166_v47 = vpop.permute.xlu1 %4165  ;;  %v4249_v51 = vpop.permute.xlu0 %4248 }
 0x7c3   : > { %3559 = vadd.xlane.f32.xlu0 %v3558_v34 }
 0x7c6   : > { %v4329_v50 = vpop.permute.xlu1 %4328 }
 0x7cf   : > { %4325 = vrot.lane.b32.xlu1 %v4069_v36, %s6296_s29 }
 0x7d3   : > { %4488 = vrot.lane.b32.xlu1 %v6876_v38, %s6295_s28 }
 0x7d7   : > { %4485 = vrot.lane.b32.xlu1 %v6615_v32, %s6296_s29 }
 0x7d9   : > { %4245 = vrot.lane.b32.xlu0 %v6882_v39, %s6296_s29 }
 0x7dd   : > { %4408 = vrot.lane.b32.xlu0 %v4069_v36, %s6295_s28  ;;  %s6045_s28 = smul.u32 48, %s421_s26 }
 0x7e1   : > { %4405 = vrot.lane.b32.xlu0 %v6876_v38, %s6296_s29  ;;  %s7089_s29 = scalar_lea.hbm %s7144_s12, %s6047_s19 }
 0x83e   : > { %v3545_v32 = vpop.xlane.xlu1 %3544 }
 0x83f   : > { %6186 = vrcp.f32 %v3545_v32  ;;  %v4078_v32 = vld [vmem:[#allocation2 + $0x10] sm:$0xff] }
 0x842   : > { %v3551_v52 = vpop.xlane.xlu1 %3550 }
 0x843   : > { %6188 = vrcp.f32 %v3551_v52  ;;  %v3548_v54 = vpop.xlane.xlu0 %3547 }
 0x844   : > { %6190 = vrcp.f32 %v3548_v54 }
 0x847   : > { %v3557_v55 = vpop.xlane.xlu1 %3556 }
 0x848   : > { %6192 = vrcp.f32 %v3557_v55  ;;  %v3554_v57 = vpop.xlane.xlu0 %3553 }
 0x849   : > { %6194 = vrcp.f32 %v3554_v57 }
 0x84b   : > { %v4326_v11 = vpop.permute.xlu1 %4325 }
 0x84c   : > { %v6187_v58 = vpop.eup %6186  ;;  %v3560_v61 = vpop.xlane.xlu0 %3559 }
 0x84d   : > { %6196 = vrcp.f32 %v3560_v61  ;;  %v3567_v62 = vmul.f32 %v6187_v58, %v6175_v20 }
 0x84f   : > { %5924 = vmatmul.mubr.msk.f32.vlgmr.msra.gmra.mxu1 %vm952_vm5, %v3567_v62  ;;  %v4489_v12 = vpop.permute.xlu1 %4488 }
 0x850   : > { %v6189_v63 = vpop.eup %6188  ;;  %5932 = vmatpush3.msra.mxu1 %v3729_v33  ;;  %5933 = vmatprep.mubr.msk.f32.mxu1 %vm6286_vm4, %v6285_v17  ;;  %v4246_v31 = vpop.permute.xlu0 %4245 }
 0x851   : > { %v6191_v4 = vpop.eup %6190  ;;  %5941 = vmatprep.subr.mxu1 %v6285_v17  ;;  %v3569_v6 = vmul.f32 %v6189_v63, %v6177_v42 }
 0x852   : > { %v3568_v7 = vmul.f32 %v6191_v4, %v6179_v22 }
 0x853   : > { %5934 = vmatmul.mubr.msk.f32.vlgmr.msra.gmra.mxu1 %vm952_vm5, %v3569_v6  ;;  %v4486_v59 = vpop.permute.xlu1 %4485 }
 0x854   : > { %5929 = vmatmul.mubr.msk.f32.vlgmr.msra.gmra.mxu0 %vm952_vm5, %v3568_v7  ;;  %5942 = vmatpush3.msra.mxu1 %v3883_v29  ;;  %v4409_v3 = vpop.permute.xlu0 %4408 }
 0x855   : > { %v6193_v2 = vpop.eup %6192  ;;  %5937 = vmatpush3.msra.mxu0 %v3806_v41  ;;  %5938 = vmatprep.mubr.msk.f32.mxu0 %vm6286_vm4, %v6285_v17 }
 0x856   : > { %v6195_v8 = vpop.eup %6194  ;;  %5943 = vmatprep.mubr.msk.f32.mxu1 %vm6286_vm4, %v6285_v17  ;;  %5946 = vmatprep.subr.mxu0 %v6285_v17  ;;  %v3571_v30 = vmul.f32 %v6193_v2, %v6181_v25 }
 0x857   : > { %5951 = vmatprep.subr.mxu1 %v6285_v17  ;;  %v3570_v9 = vmul.f32 %v6195_v8, %v6183_v26 }
 0x858   : > { %5944 = vmatmul.mubr.msk.f32.vlgmr.msra.gmra.mxu1 %vm952_vm5, %v3571_v30  ;;  %v4406_v37 = vpop.permute.xlu0 %4405 }
 0x859   : > { %5939 = vmatmul.mubr.msk.f32.vlgmr.msra.gmra.mxu0 %vm952_vm5, %v3570_v9  ;;  %5952 = vmatpush3.xpose.msk.msra.mxu1 %vm952_vm5, %v4089_v46 }
 0x85a   : > { %v6197_v53 = vpop.eup %6196  ;;  %5947 = vmatpush3.msra.mxu0 %v3960_v43  ;;  %5948 = vmatprep.mubr.msk.f32.mxu0 %vm6286_vm4, %v6285_v17 }
 0x85b   : > { %5953 = vmatprep.mubr.msk.f32.mxu1 %vm6286_vm4, %v6285_v17  ;;  %5956 = vmatprep.subr.mxu0 %v6285_v17  ;;  %v3572_v10 = vmul.f32 %v6197_v53, %v6871_v56 }
 0x85c   : > { %5961 = vmatprep.subr.mxu1 %v6285_v17  ;;  %5954 = vmatmul.mubr.msk.f32.vlgmr.msra.gmra.mxu1 %vm952_vm5, %v4086_v48 }
 0x85d   : > { %5949 = vmatmul.mubr.msk.f32.vlgmr.msra.gmra.mxu0 %vm952_vm5, %v3572_v10  ;;  %5962 = vmatpush3.xpose.msk.msra.mxu1 %vm952_vm5, %v4249_v51  ;;  %v4080_v51 = vld [vmem:[#allocation2 + $0x20] sm:$0xff] }
 0x85e   : > { %5957 = vmatpush3.xpose.msk.msra.mxu0 %vm952_vm5, %v4169_v45  ;;  %5958 = vmatprep.mubr.msk.f32.mxu0 %vm6286_vm4, %v6285_v17 }
 0x85f   : > { %5963 = vmatprep.mubr.msk.f32.mxu1 %vm6286_vm4, %v6285_v17  ;;  %5966 = vmatprep.subr.mxu0 %v6285_v17 }
 0x860   : > { %5971 = vmatprep.subr.mxu1 %v6285_v17  ;;  %5964 = vmatmul.mubr.msk.f32.vlgmr.msra.gmra.mxu1 %vm952_vm5, %v4246_v31 }
 0x861   : > { %5959 = vmatmul.mubr.msk.f32.vlgmr.msra.gmra.mxu0 %vm952_vm5, %v4166_v47  ;;  %5972 = vmatpush3.xpose.msk.msra.mxu1 %vm952_vm5, %v4409_v3 }
 0x862   : > { %5967 = vmatpush3.xpose.msk.msra.mxu0 %vm952_vm5, %v4329_v50  ;;  %5968 = vmatprep.mubr.msk.f32.mxu0 %vm6286_vm4, %v6285_v17 }
 0x863   : > { %5973 = vmatprep.mubr.msk.f32.mxu1 %vm6286_vm4, %v6285_v17  ;;  %5976 = vmatprep.subr.mxu0 %v6285_v17 }
 0x864   : > { %5974 = vmatmul.mubr.msk.f32.vlgmr.msra.gmra.mxu1 %vm952_vm5, %v4406_v37  ;;  %5981 = vmatprep.subr.mxu1 %v6285_v17 }
 0x865   : > { %5969 = vmatmul.mubr.msk.f32.vlgmr.msra.gmra.mxu0 %vm952_vm5, %v4326_v11  ;;  %5983 = vmatprep.mubr.msk.f32.mxu1 %vm6286_vm4, %v6285_v17 }
 0x866   : > { %5977 = vmatpush3.xpose.msk.msra.mxu0 %vm952_vm5, %v4489_v12  ;;  %5978 = vmatprep.mubr.msk.f32.mxu0 %vm6286_vm4, %v6285_v17 }
 0x867   : > { %5986 = vmatprep.subr.mxu0 %v6285_v17 }
 0x869   : > { %5979 = vmatmul.mubr.msk.f32.vlgmr.msra.gmra.mxu0 %vm952_vm5, %v4486_v59 }
 0x86a   : > { %5988 = vmatprep.mubr.msk.f32.mxu0 %vm6286_vm4, %v6285_v17 }
 0x90f   : > { %v6942_v13 = vpop.f32.mrf.mxu1 }
 0x911   : > { %v5925_v1 = vpop.f32.mrf.mxu1 }
 0x913   : > { %v6944_v14 = vpop.f32.mrf.mxu1 }
 0x914   : > { %v6946_v15 = vpop.f32.mrf.mxu0 }
 0x915   : > { %v5935_v60 = vpop.f32.mrf.mxu1 }
 0x916   : > { %v5930_v16 = vpop.f32.mrf.mxu0 }
 0x918   : > { %v6948_v18 = vpop.f32.mrf.mxu1 }
 0x919   : > { %v6950_v19 = vpop.f32.mrf.mxu0 }
 0x91a   : > { %v5945_v20 = vpop.f32.mrf.mxu1 }
 0x91b   : > { %v5940_v49 = vpop.f32.mrf.mxu0 }
 0x91c   : > { %v4160_v42 = vpop.f32.mrf.mxu1 }
 0x91d   : > { %v6952_v22 = vpop.f32.mrf.mxu0  ;;  %v4564_v23 = vsel %vm952_vm5, %v4160_v42, -inf }
 0x91e   : > { %4565 = vmax.xlane.f32.xlu0 %v4564_v23  ;;  %v5955_v24 = vpop.f32.mrf.mxu1 }
 0x91f   : > { %v5950_v25 = vpop.f32.mrf.mxu0  ;;  %v4083_v24 = vld [vmem:[#allocation2 + $0x48] sm:$0xff] }
 0x920   : > { %v4320_v26 = vpop.f32.mrf.mxu1  ;;  %v4082_v25 = vld [vmem:[#allocation2 + $0x40] sm:$0xff] }
 0x921   : > { %v4240_v27 = vpop.f32.mrf.mxu0  ;;  %v4570_v28 = vsel %vm952_vm5, %v4320_v26, -inf }
 0x922   : > { %4571 = vmax.xlane.f32.xlu0 %v4570_v28  ;;  %v5965_v56 = vpop.f32.mrf.mxu1  ;;  %v4567_v34 = vsel %vm952_vm5, %v4240_v27, -inf }
 0x923   : > { %4568 = vmax.xlane.f32.xlu1 %v4567_v34  ;;  %v5960_v36 = vpop.f32.mrf.mxu0 }
 0x924   : > { %v4480_v33 = vpop.f32.mrf.mxu1 }
 0x925   : > { %v4400_v41 = vpop.f32.mrf.mxu0  ;;  %v4576_v43 = vsel %vm952_vm5, %v4480_v33, -inf }
 0x926   : > { %v5975_v29 = vpop.f32.mrf.mxu1  ;;  %v4573_v45 = vsel %vm952_vm5, %v4400_v41, -inf }
 0x927   : > { %4577 = vmax.xlane.f32.xlu1 %v4576_v43  ;;  %4574 = vmax.xlane.f32.xlu0 %v4573_v45  ;;  %v5970_v46 = vpop.f32.mrf.mxu0 }
 0x929   : > { %v4560_v47 = vpop.f32.mrf.mxu0 }
 0x92a   : > { %v4579_v48 = vsel %vm952_vm5, %v4560_v47, -inf }
 0x92b   : > { %4580 = vmax.xlane.f32.xlu0 %v4579_v48  ;;  %v5980_v50 = vpop.f32.mrf.mxu0 }
 0x938   : > { %4631 = vrot.lane.b32.xlu1 %v4078_v32, %s6297_s15 }
 0x93c   : > { %4785 = vrot.lane.b32.xlu1 %v4080_v51, %s6297_s15 }
 0x940   : > { %4862 = vrot.lane.b32.xlu1 %v6876_v38, %s6297_s15 }
 0x941   : > { %4708 = vrot.lane.b32.xlu0 %v6882_v39, %s6297_s15 }
 0x9a7   : > { %v4566_v52 = vpop.xlane.xlu0 %4565 }
 0x9a8   : > { %v4582_v54 = vsub.f32 %v4160_v42, %v4566_v52 }
 0x9aa   : > { %v4588_v55 = vmul.f32 1.442695, %v4582_v54 }
 0x9ab   : > { %v4572_v57 = vpop.xlane.xlu0 %4571 }
 0x9ac   : > { %6198 = vpow2.f32 %v4588_v55  ;;  %v4584_v58 = vsub.f32 %v4320_v26, %v4572_v57  ;;  %v4569_v61 = vpop.xlane.xlu1 %4568 }
 0x9ad   : > { %v4583_v62 = vsub.f32 %v4240_v27, %v4569_v61  ;;  %v5131_v61 = vld [vmem:[%s7140_s8 + $0x10] sm:$0xff] }
 0x9ae   : > { %v4592_v63 = vmul.f32 1.442695, %v4584_v58  ;;  %v5132_v58 = vld [vmem:[%s7140_s8 + $0x18] sm:$0xff] }
 0x9af   : > { %v4590_v4 = vmul.f32 1.442695, %v4583_v62  ;;  %v5130_v62 = vld [vmem:[%s7140_s8 + $0x8] sm:$0xff] }
 0x9b0   : > { %6200 = vpow2.f32 %v4592_v63  ;;  %v4578_v6 = vpop.xlane.xlu1 %4577  ;;  %v4575_v7 = vpop.xlane.xlu0 %4574  ;;  %v5129_v63 = vld [vmem:[%s7140_s8] sm:$0xff] }
 0x9b1   : > { %6202 = vpow2.f32 %v4590_v4  ;;  %v4586_v2 = vsub.f32 %v4480_v33, %v4578_v6  ;;  %v4585_v8 = vsub.f32 %v4400_v41, %v4575_v7 }
 0x9b3   : > { %v4596_v38 = vmul.f32 1.442695, %v4586_v2  ;;  %v4594_v30 = vmul.f32 1.442695, %v4585_v8 }
 0x9b4   : > { %v4632_v31 = vpop.permute.xlu1 %4631  ;;  %v4581_v39 = vpop.xlane.xlu0 %4580 }
 0x9b5   : > { %6204 = vpow2.f32 %v4596_v38  ;;  %v4587_v9 = vsub.f32 %v4560_v47, %v4581_v39  ;;  %5982 = vmatpush3.msra.mxu1 %v4632_v31  ;;  %v5256_v39 = vld [vmem:[%s7142_s10 + $0x18] sm:$0xff] }
 0x9b6   : > { %6206 = vpow2.f32 %v4594_v30  ;;  %5991 = vmatprep.subr.mxu1 %v6285_v17 }
 0x9b7   : > { %v4598_v53 = vmul.f32 1.442695, %v4587_v9 }
 0x9b8   : > { %v4709_v10 = vpop.permute.xlu0 %4708 }
 0x9b9   : > { %v6199_v11 = vpop.eup %6198  ;;  %6208 = vpow2.f32 %v4598_v53  ;;  %5987 = vmatpush3.msra.mxu0 %v4709_v10 }
 0x9ba   : > { %v4600_v3 = vsel %vm952_vm5, %v6199_v11, 0.0  ;;  %5996 = vmatprep.subr.mxu0 %v6285_v17 }
 0x9bb   : > { %4601 = vadd.xlane.f32.xlu1 %v4600_v3 }
 0x9bd   : > { %v6201_v12 = vpop.eup %6200 }
 0x9be   : > { %v6203_v37 = vpop.eup %6202  ;;  %v4606_v59 = vsel %vm952_vm5, %v6201_v12, 0.0 }
 0x9bf   : > { %4607 = vadd.xlane.f32.xlu1 %v4606_v59  ;;  %v4603_v1 = vsel %vm952_vm5, %v6203_v37, 0.0 }
 0x9c0   : > { %4604 = vadd.xlane.f32.xlu0 %v4603_v1 }
 0x9c2   : > { %v6971_v60 = vpop.eup %6204 }
 0x9c3   : > { %v6973_v16 = vpop.eup %6206  ;;  %v4612_v20 = vsel %vm952_vm5, %v6971_v60, 0.0 }
 0x9c4   : > { %4613 = vadd.xlane.f32.xlu1 %v4612_v20  ;;  %v4609_v49 = vsel %vm952_vm5, %v6973_v16, 0.0 }
 0x9c5   : > { %4610 = vadd.xlane.f32.xlu0 %v4609_v49 }
 0x9c6   : > { %v6979_v42 = vpop.eup %6208 }
 0x9c7   : > { %v4615_v23 = vsel %vm952_vm5, %v6979_v42, 0.0 }
 0x9c9   : > { %4616 = vadd.xlane.f32.xlu0 %v4615_v23 }
 0x9d5   : > { %5016 = vrot.lane.b32.xlu1 %v4083_v24, %s6297_s15 }
 0x9d9   : > { %2986 = vrot.lane.b32.xlu1 %v6830_v35, %s7145_s16 }
 0x9dd   : > { %4043 = vrot.lane.b32.xlu1 %v6946_v15, %s6299_s17 }
 0x9df   : > { %4939 = vrot.lane.b32.xlu0 %v4082_v25, %s6297_s15  ;;  %v5255_v25 = vld [vmem:[%s7142_s10 + $0x10] sm:$0xff]  ;;  %s7091_s15 = scalar_lea.sflag [#allocation5], %s421_s26 }
 0x9e1   : > { %2990 = vrot.lane.b32.xlu1 %v6836_v40, %s7145_s16 }
 0x9e3   : > { %2984 = vrot.lane.b32.xlu0 %v6828_v0, %s7145_s16  ;;  %v4786_v0 = vpop.permute.xlu1 %4785 }
 0x9e5   : > { %4047 = vrot.lane.b32.xlu1 %v6950_v19, %s6299_s17 }
 0x9e7   : > { %4041 = vrot.lane.b32.xlu0 %v6942_v13, %s6299_s17  ;;  %v4863_v35 = vpop.permute.xlu1 %4862 }
 0x9e9   : > { %2994 = vrot.lane.b32.xlu1 %v6838_v44, %s7145_s16 }
 0x9eb   : > { %2988 = vrot.lane.b32.xlu0 %v6832_v5, %s7145_s16 }
 0x9ed   : > { %4051 = vrot.lane.b32.xlu1 %v6952_v22, %s6299_s17 }
 0x9ef   : > { %4045 = vrot.lane.b32.xlu0 %v6944_v14, %s6299_s17 }
 0x9f3   : > { %2992 = vrot.lane.b32.xlu0 %v6834_v21, %s7145_s16  ;;  %s6301_s16 = smov [#allocation4]  }
 0x9f4   : > { %s6226_s0 = sshll.u32 %s6301_s16, 4  ;;  %s6227_s0 = int_to_ptr.vmem [resolvable:$false] %s6226_s0 }
 0x9f5   : > { %s6228_s1 = scalar_lea.vmem %s6227_s0, 1536 }
 0x9f7   : > { %4049 = vrot.lane.b32.xlu0 %v6948_v18, %s6299_s17  ;;  %s423_s17 = scalar_lea.vmem [#allocation4], %s6045_s28 }
 0xa44   : > { %v4602_v40 = vpop.xlane.xlu1 %4601 }
 0xa45   : > { %6210 = vrcp.f32 %v4602_v40 }
 0xa48   : > { %v4608_v13 = vpop.xlane.xlu1 %4607 }
 0xa49   : > { %6212 = vrcp.f32 %v4608_v13  ;;  %v4605_v15 = vpop.xlane.xlu0 %4604  ;;  %v5571_v13 = vld [vmem:[%s7141_s9] ss:$0 sm:$0xff] }
 0xa4a   : > { %6214 = vrcp.f32 %v4605_v15 }
 0xa4d   : > { %v4614_v44 = vpop.xlane.xlu1 %4613 }
 0xa4e   : > { %6216 = vrcp.f32 %v4614_v44  ;;  %v4611_v5 = vpop.xlane.xlu0 %4610 }
 0xa4f   : > { %6218 = vrcp.f32 %v4611_v5 }
 0xa51   : > { %v5017_v19 = vpop.permute.xlu1 %5016 }
 0xa52   : > { %v6211_v22 = vpop.eup %6210  ;;  %v4617_v14 = vpop.xlane.xlu0 %4616 }
 0xa53   : > { %6220 = vrcp.f32 %v4617_v14  ;;  %v4624_v21 = vmul.f32 %v6211_v22, %v6199_v11 }
 0xa55   : > { %v2987_v26 = vpop.permute.xlu1 %2986  ;;  %5984 = vmatmul.mubr.msk.f32.vlgmr.msra.gmra.mxu1 %vm952_vm5, %v4624_v21 }
 0xa56   : > { %v6213_v18 = vpop.eup %6212  ;;  %3004 = vst.msk [vmem:[#allocation3 + $0x8] sm:$0xff] %vm3002_vm6, %v2987_v26  ;;  %v4940_v27 = vpop.permute.xlu0 %4939  ;;  %5992 = vmatpush3.msra.mxu1 %v4786_v0  ;;  %5993 = vmatprep.mubr.msk.f32.mxu1 %vm6286_vm4, %v6285_v17  ;;  %v5254_v0 = vld [vmem:[%s7142_s10 + $0x8] sm:$0xff] }
 0xa57   : > { %v6215_v28 = vpop.eup %6214  ;;  %6001 = vmatprep.subr.mxu1 %v6285_v17  ;;  %v4626_v56 = vmul.f32 %v6213_v18, %v6201_v12 }
 0xa58   : > { %v4625_v34 = vmul.f32 %v6215_v28, %v6203_v37 }
 0xa59   : > { %v4044_v36 = vpop.permute.xlu1 %4043  ;;  %5994 = vmatmul.mubr.msk.f32.vlgmr.msra.gmra.mxu1 %vm952_vm5, %v4626_v56  ;;  %v5578_v56 = vld [vmem:[%s7143_s11] ss:$0 sm:$0xff] }
 0xa5a   : > { %4061 = vst.msk [vmem:[#allocation3 + $0x8] sm:$0xff] %vm4059_vm7, %v4044_v36  ;;  %v2985_v33 = vpop.permute.xlu0 %2984  ;;  %5989 = vmatmul.mubr.msk.f32.vlgmr.msra.gmra.mxu0 %vm952_vm5, %v4625_v34  ;;  %6002 = vmatpush3.msra.mxu1 %v4940_v27 }
 0xa5b   : > { %v6217_v41 = vpop.eup %6216  ;;  %3003 = vst.msk [vmem:[#allocation3] sm:$0xff] %vm3002_vm6, %v2985_v33  ;;  %5997 = vmatpush3.msra.mxu0 %v4863_v35  ;;  %6003 = vmatprep.mubr.msk.f32.mxu1 %vm6286_vm4, %v6285_v17  ;;  %v5253_v35 = vld [vmem:[%s7142_s10] sm:$0xff] }
 0xa5c   : > { %v6219_v43 = vpop.eup %6218  ;;  %5998 = vmatprep.mubr.msk.f32.mxu0 %vm6286_vm4, %v6285_v17  ;;  %6006 = vmatprep.subr.mxu0 %v6285_v17  ;;  %v4628_v29 = vmul.f32 %v6217_v41, %v6971_v60 }
 0xa5d   : > { %v2991_v45 = vpop.permute.xlu1 %2990  ;;  %v4627_v46 = vmul.f32 %v6219_v43, %v6973_v16  ;;  %6011 = vmatprep.subr.mxu1 %v5132_v58 }
 0xa5e   : > { %3006 = vst.msk [vmem:[#allocation3 + $0x18] sm:$0xff] %vm3002_vm6, %v2991_v45  ;;  %v4042_v47 = vpop.permute.xlu0 %4041  ;;  %6004 = vmatmul.mubr.msk.f32.vlgmr.msra.gmra.mxu1 %vm952_vm5, %v4628_v29 }
 0xa5f   : > { %4060 = vst.msk [vmem:[#allocation3] sm:$0xff] %vm4059_vm7, %v4042_v47  ;;  %5999 = vmatmul.mubr.msk.f32.vlgmr.msra.gmra.mxu0 %vm952_vm5, %v4627_v46  ;;  %6012 = vmatpush3.msra.mxu1 %v5132_v58 }
 0xa60   : > { %v6221_v48 = vpop.eup %6220  ;;  %6007 = vmatpush3.msra.mxu0 %v5017_v19  ;;  %6008 = vmatprep.mubr.msk.f32.mxu0 %vm6286_vm4, %v6285_v17 }
 0xa61   : > { %v4048_v50 = vpop.permute.xlu1 %4047  ;;  %v4629_v32 = vmul.f32 %v6221_v48, %v6979_v42  ;;  %6013 = vmatprep.subr.mxu1 %v5131_v61  ;;  %6028 = vmatprep.subr.mxu0 %v5256_v39 }
 0xa62   : > { %4063 = vst.msk [vmem:[#allocation3 + $0x18] sm:$0xff] %vm4059_vm7, %v4048_v50  ;;  %v2989_v51 = vpop.permute.xlu0 %2988  ;;  %6014 = vmatpush3.msra.mxu1 %v5131_v61 }
 0xa63   : > { %3005 = vst.msk [vmem:[#allocation3 + $0x10] sm:$0xff] %vm3002_vm6, %v2989_v51  ;;  %6009 = vmatmul.mubr.msk.f32.vlgmr.msra.gmra.mxu0 %vm952_vm5, %v4629_v32  ;;  %6015 = vmatprep.subr.mxu1 %v5130_v62 }
 0xa64   : > { %6016 = vmatpush3.msra.mxu1 %v5130_v62  ;;  %6029 = vmatpush3.msra.mxu0 %v5256_v39 }
 0xa65   : > { %v2995_v52 = vpop.permute.xlu1 %2994  ;;  %6017 = vmatprep.subr.mxu1 %v5129_v63  ;;  %6030 = vmatprep.subr.mxu0 %v5255_v25 }
 0xa66   : > { %3008 = vst.msk [vmem:[#allocation3 + $0x28] sm:$0xff] %vm3002_vm6, %v2995_v52  ;;  %v4046_v54 = vpop.permute.xlu0 %4045  ;;  %6018 = vmatpush3.msra.mxu1 %v5129_v63  ;;  %6031 = vmatpush3.msra.mxu0 %v5255_v25 }
 0xa67   : > { %4062 = vst.msk [vmem:[#allocation3 + $0x10] sm:$0xff] %vm4059_vm7, %v4046_v54  ;;  %6032 = vmatprep.subr.mxu0 %v5254_v0 }
 0xa68   : > { %6033 = vmatpush3.msra.mxu0 %v5254_v0 }
 0xa69   : > { %v4052_v55 = vpop.permute.xlu1 %4051  ;;  %6034 = vmatprep.subr.mxu0 %v5253_v35 }
 0xa6a   : > { %4065 = vst.msk [vmem:[#allocation3 + $0x28] sm:$0xff] %vm4059_vm7, %v4052_v55  ;;  %v2993_v17 = vpop.permute.xlu0 %2992  ;;  %6035 = vmatpush3.msra.mxu0 %v5253_v35 }
 0xa6b   : > { %3007 = vst.msk [vmem:[#allocation3 + $0x20] sm:$0xff] %vm3002_vm6, %v2993_v17 }
 0xa6e   : > { %v4050_v57 = vpop.permute.xlu0 %4049 }
 0xa6f   : > { %4064 = vst.msk [vmem:[#allocation3 + $0x20] sm:$0xff] %vm4059_vm7, %v4050_v57 }
 0xb15   : > { %v4703_v4 = vpop.f32.mrf.mxu1 }
 0xb16   : > { %5098 = vrot.lane.b32.xlu0 %v4703_v4, %s6300_s18 }
 0xb17   : > { %v5985_v6 = vpop.f32.mrf.mxu1 }
 0xb19   : > { %v4857_v7 = vpop.f32.mrf.mxu1 }
 0xb1a   : > { %v4780_v2 = vpop.f32.mrf.mxu0  ;;  %5102 = vrot.lane.b32.xlu0 %v4857_v7, %s6300_s18 }
 0xb1b   : > { %5100 = vrot.lane.b32.xlu1 %v4780_v2, %s6300_s18  ;;  %v5995_v8 = vpop.f32.mrf.mxu1 }
 0xb1c   : > { %v5990_v38 = vpop.f32.mrf.mxu0 }
 0xb1e   : > { %v5011_v30 = vpop.f32.mrf.mxu1 }
 0xb1f   : > { %v4934_v31 = vpop.f32.mrf.mxu0  ;;  %5106 = vrot.lane.b32.xlu0 %v5011_v30, %s6300_s18 }
 0xb20   : > { %5104 = vrot.lane.b32.xlu1 %v4934_v31, %s6300_s18  ;;  %v6005_v9 = vpop.f32.mrf.mxu1 }
 0xb21   : > { %v6000_v53 = vpop.f32.mrf.mxu0 }
 0xb23   : > { %v5088_v10 = vpop.f32.mrf.mxu0 }
 0xb24   : > { %5108 = vrot.lane.b32.xlu1 %v5088_v10, %s6300_s18  ;;  %s5398_s18 = sshll.u32 %s423_s17, 4  ;;  %s7084_s18 = int_to_ptr.vmem [resolvable:$true] %s5398_s18 }
 0xb25   : > { %v6010_v11 = vpop.f32.mrf.mxu0  ;;  %s6222_s25 = scalar_lea.vmem %s7084_s18, 768  ;;  %p6229_p0 = scmp.lt.s32.totalorder %s7084_s18, %s6227_s0 }
 0xb26   : > { %p6223_p11 = scmp.ne.s32.totalorder %s7084_s18, %s6222_s25  ;;  %p6230_p1 = scmp.lt.s32.totalorder %s6228_s1, %s6222_s25 }
 0xb28   : > { %p6224_p12 = pnand %p6223_p11, %p6406_p5  ;;  %p6231_p2 = por %p6230_p1, %p6229_p0 }
 0xb2a   : > { %p6225_p13 = pneg %p6224_p12 }
 0xb2c   : > { %p6232_p3 = pnand %p6231_p2, %p6225_p13 }
 0xb88   : > { %v5099_v3 = vpop.permute.xlu0 %5098 }
 0xb89   : > { %5117 = vst.msk [vmem:[#allocation3] sm:$0xff] %vm5116_vm8, %v5099_v3 }
 0xb8c   : > { %v5103_v12 = vpop.permute.xlu0 %5102 }
 0xb8d   : > { %5119 = vst.msk [vmem:[#allocation3 + $0x10] sm:$0xff] %vm5116_vm8, %v5103_v12  ;;  %v5101_v37 = vpop.permute.xlu1 %5100 }
 0xb8e   : > { %5118 = vst.msk [vmem:[#allocation3 + $0x8] sm:$0xff] %vm5116_vm8, %v5101_v37 }
 0xb90   : > { %v5123_v59 = vld [vmem:[#allocation3] sm:$0xff] }
 0xb91   : > { %v5107_v1 = vpop.permute.xlu0 %5106  ;;  %6019 = vmatprep.mubr.msk.f32.mxu1 %vm772_vm2, %v5123_v59 }
 0xb92   : > { %5121 = vst.msk [vmem:[#allocation3 + $0x20] sm:$0xff] %vm5116_vm8, %v5107_v1  ;;  %v5105_v60 = vpop.permute.xlu1 %5104 }
 0xb93   : > { %5120 = vst.msk [vmem:[#allocation3 + $0x18] sm:$0xff] %vm5116_vm8, %v5105_v60 }
 0xb94   : > { %v5125_v16 = vld [vmem:[#allocation3 + $0x10] sm:$0xff] }
 0xb95   : > { %v5124_v20 = vld [vmem:[#allocation3 + $0x8] sm:$0xff] }
 0xb96   : > { %v5109_v49 = vpop.permute.xlu1 %5108  ;;  %6020 = vmatmul.mubr.msk.f32.vlgmr.msra.gmra.mxu1 %vm772_vm2, %v5124_v20 }
 0xb97   : > { %5122 = vst.msk [vmem:[#allocation3 + $0x28] sm:$0xff] %vm5116_vm8, %v5109_v49  ;;  %6022 = vmatprep.mubr.msk.f32.mxu1 %vm772_vm2, %v5125_v16 }
 0xb99   : > { %v5127_v42 = vld [vmem:[#allocation3 + $0x20] sm:$0xff] }
 0xb9a   : > { %v5126_v23 = vld [vmem:[#allocation3 + $0x18] sm:$0xff] }
 0xb9b   : > { %6023 = vmatmul.mubr.msk.f32.gmra.mxu1 %vm772_vm2, %v5126_v23 }
 0xb9c   : > { %6025 = vmatprep.mubr.msk.f32.mxu1 %vm772_vm2, %v5127_v42 }
 0xb9e   : > { %v5128_v24 = vld [vmem:[#allocation3 + $0x28] sm:$0xff] }
 0xb9f   : > { %6026 = vmatmul.mubr.msk.f32.gmra.mxu1 %vm772_vm2, %v5128_v24 }
 0xc56   : > { %v6021_v40 = vpop.f32.mrf.mxu1 }
 0xc57   : > { %v5230_v5 = vadd.f32 %v6021_v40, %v5571_v13 }
 0xc58   : > { %v5224_v15 = vpop.f32.mrf.mxu1 }
 0xc59   : > { %v5225_v44 = vadd.f32 %v5571_v13, %v5224_v15 }
 0xc5b   : > { %v6024_v19 = vpop.f32.mrf.mxu1  ;;  %6036 = vmatprep.mubr.msk.f32.mxu0 %vm772_vm2, %v5225_v44 }
 0xc5c   : > { %6037 = vmatmul.mubr.msk.f32.vlgmr.msra.gmra.mxu0 %vm772_vm2, %v5230_v5  ;;  %v5240_v21 = vadd.f32 %v6024_v19, %v5571_v13 }
 0xc5d   : > { %v5234_v22 = vpop.f32.mrf.mxu1 }
 0xc5e   : > { %v5235_v14 = vadd.f32 %v5571_v13, %v5234_v22 }
 0xc5f   : > { %v6027_v26 = vpop.f32.mrf.mxu1 }
 0xc60   : > { %6039 = vmatprep.mubr.msk.f32.mxu0 %vm772_vm2, %v5235_v14  ;;  %v5250_v28 = vadd.f32 %v6027_v26, %v5571_v13 }
 0xc61   : > { %v5244_v18 = vpop.f32.mrf.mxu1  ;;  %6040 = vmatmul.mubr.msk.f32.gmra.mxu0 %vm772_vm2, %v5240_v21 }
 0xc62   : > { %v5245_v27 = vadd.f32 %v5571_v13, %v5244_v18 }
 0xc64   : > { %6042 = vmatprep.mubr.msk.f32.mxu0 %vm772_vm2, %v5245_v27 }
 0xc65   : > { %6043 = vmatmul.mubr.msk.f32.gmra.mxu0 %vm772_vm2, %v5250_v28 }
 0xd1c   : > { %v6038_v34 = vpop.f32.mrf.mxu0 }
 0xd1d   : > { %v5354_v36 = vadd.f32 %v6038_v34, %v5578_v56 }
 0xd1e   : > { %v5348_v33 = vpop.f32.mrf.mxu0 }
 0xd1f   : > { %5378 = vst [vmem:[%s423_s17 + $0x8] sm:$0xff] %v5354_v36  ;;  %v5349_v41 = vadd.f32 %v5578_v56, %v5348_v33 }
 0xd21   : > { %5377 = vst [vmem:[%s423_s17] sm:$0xff] %v5349_v41  ;;  %v6041_v43 = vpop.f32.mrf.mxu0 }
 0xd22   : > { %v5364_v29 = vadd.f32 %v6041_v43, %v5578_v56 }
 0xd23   : > { %v5358_v45 = vpop.f32.mrf.mxu0 }
 0xd24   : > { %5380 = vst [vmem:[%s423_s17 + $0x18] sm:$0xff] %v5364_v29  ;;  %v5359_v46 = vadd.f32 %v5578_v56, %v5358_v45 }
 0xd25   : > { %v6044_v47 = vpop.f32.mrf.mxu0 }
 0xd26   : > { %5379 = vst [vmem:[%s423_s17 + $0x10] sm:$0xff] %v5359_v46  ;;  %v5374_v48 = vadd.f32 %v6044_v47, %v5578_v56 }
 0xd27   : > { %v5368_v50 = vpop.f32.mrf.mxu0 }
 0xd28   : > { %5382 = vst [vmem:[%s423_s17 + $0x28] sm:$0xff] %v5374_v48  ;;  %v5369_v32 = vadd.f32 %v5578_v56, %v5368_v50 }
 0xd2a   : > { %5381 = vst [vmem:[%s423_s17 + $0x20] sm:$0xff] %v5369_v32 }
 0xd2b   : > { %6235 = shalt.err (!%p6232_p3)
}
 0xd2c   : > { %s6236_s26 = scalar_lea.hbm %s7089_s29, 768  ;;  %s6240_s16 = scalar_lea.hbm %s7144_s12, 1536 }
 0xd2d   : > { %p6237_p4 = scmp.ne.s32.totalorder %s7089_s29, %s6236_s26  ;;  %p6241_p9 = scmp.lt.s32.totalorder %s7089_s29, %s7144_s12 }
 0xd2e   : > { %p6242_p10 = scmp.lt.s32.totalorder %s6240_s16, %s6236_s26 }
 0xd2f   : > { %p6238_p7 = pnand %p6237_p4, %p6406_p5 }
 0xd30   : > { %p6243_p11 = por %p6242_p10, %p6241_p9 }
 0xd31   : > { %p6239_p8 = pneg %p6238_p7 }
 0xd33   : > { %p6244_p12 = pnand %p6243_p11, %p6239_p8 }
 0xd35   : > { %6247 = shalt.err (!%p6244_p12)
}
 0xd36   : > { %s6302_s0 = smov 128   ;;  %s7152_s1 = smov 8  }
 0xd37   : > { %6048 = dma.vmem_to_hbm [thread:$0]  (%p6406_p5), %s7084_s18, 768, %s7089_s29, %s7091_s15, %s6302_s0, %s6302_s0, %s7152_s1  }
 0xd38 PF: > { %p6054_p13 = scmp.ge.s32.totalorder %s6282_s24, 2  ;;  %s5413_s25 = sand.u32 1, %s6270_s21  }
 0xd39   : > { %s5414_s26 = scalar_lea.sflag [#allocation5], %s5413_s25 }
 0xd3a   : > { %p6051_p0 = pnand %p6054_p13, %p6410_p6 }
 0xd3c   : > { %p6052_p1 = pneg %p6051_p0 }
 0xd3e   : > { %6265 = dma.done.wait (%p6052_p1), %s5414_s26, 768  }
 0xd3f   : > { %6267 = vsyncadd (%p6052_p1), %s5414_s26, 4294966528  ;;  %p22_p2 = scmp.ge.s32.totalorder %s6393_s27, 4   ;;  %s7153_s21 = smov %s6274_s22 }
 0xd40   : > { %s7154_s22 = smov %s6278_s23  ;;  %s7155_s23 = smov %s6404_s30 }
 0xd41   : > { %s7156_s24 = smov %s6393_s27  ;;  %24 = sbr.rel (!%p22_p2) target bundleno = 6 (0x6), region = 108 }
 0xd46   :  { %5419 = vsyncpa [#allocation5], 1 }
 0xd47   :  { %5421 = vsyncpa [#allocation5 + $0x1], 1 }

</bundles_post_ra>
